<compile_context>
chip_gen: v7x
topology: tpu7x:2x2x1
jax: 0.10.0
libtpu: 0.0.40
codegen_flags: <defaults>
</compile_context>

<pallas_src>
import functools

import jax
import jax.numpy as jnp
import numpy as np
from jax.experimental import pallas as pl
from jax.experimental.pallas import tpu as pltpu

_PAD = 3  # padding for the largest (7x7) filter; smaller filters crop into it.

# Separable taps, identical to SobelFilter.__init__:
#   kernel_x = outer(W, X)  -> derivative W along H, smoothing X along W
#   kernel_y = kernel_x^T   -> smoothing X along H, derivative W along W
_SOBEL_TAPS = {
    3: ((1.0, 2.0, 1.0), (-1.0, 0.0, 1.0)),
    5: ((1.0, 4.0, 6.0, 4.0, 1.0), (-1.0, -2.0, 0.0, 2.0, 1.0)),
    7: ((1.0, 6.0, 15.0, 20.0, 15.0, 6.0, 1.0),
        (-1.0, -2.0, -3.0, 0.0, 3.0, 2.0, 1.0)),
}
_KSIZES = (3, 5, 7)


# ----------------------------------------------------------------------------
# Pass 1: fused, separable Sobel for k = 3, 5, 7.
# ----------------------------------------------------------------------------
def _sobel_pass1_kernel(xpad_ref, sob_ref, max_ref, *, H, W, taps):
    """xpad_ref: (1, H+6, W+6) f32  (edge-padded with pad=3)
       sob_ref : (1, 3, H, W)  f32  unnormalized (|sx|+|sy|)/2 per filter size
       max_ref : (1, 3, 128)   f32  per-filter max of this image (lane-bcast)
    """
    xp = xpad_ref[0]                                   # (H + 6, W + 6)
    for j, (k, smooth, deriv) in enumerate(taps):
        pk = k // 2
        off = _PAD - pk                                # crop pad-3 -> pad-pk
        rows = H + 2 * pk

        # ---- horizontal 1-D pass (lane axis): smooth (X) and derivative (W).
        hs = None                                      # smoothed rows
        hd = None                                      # differentiated rows
        for b in range(k):
            patch = xp[off:off + rows, off + b:off + b + W]   # (rows, W)
            ws = smooth[b]
            wd = deriv[b]
            hs = patch * ws if hs is None else hs + patch * ws
            if wd != 0.0:
                hd = patch * wd if hd is None else hd + patch * wd

        # ---- vertical 1-D pass (sublane axis).
        sx = None     # conv with kernel_x = vertical derivative of hs
        sy = None     # conv with kernel_y = vertical smoothing of hd
        for a in range(k):
            wd = deriv[a]
            ws = smooth[a]
            if wd != 0.0:
                row_s = hs[a:a + H, :]
                sx = row_s * wd if sx is None else sx + row_s * wd
            row_d = hd[a:a + H, :]
            sy = row_d * ws if sy is None else sy + row_d * ws

        sob = (jnp.abs(sx) + jnp.abs(sy)) * 0.5        # (H, W)
        sob_ref[0, j, :, :] = sob
        max_ref[0, j:j + 1, :] = jnp.full((1, 128), jnp.max(sob), jnp.float32)


def _run_pass1(xpad, n, h, w):
    hp, wp = h + 2 * _PAD, w + 2 * _PAD
    taps = tuple((k,) + _SOBEL_TAPS[k] for k in _KSIZES)
    kernel = functools.partial(_sobel_pass1_kernel, H=h, W=w, taps=taps)

    # Live block bytes per grid step (input + both outputs), x2 double buffer,
    # plus generous headroom for in-kernel temporaries; clamp to [32, 64] MiB.
    block_bytes = 4 * (hp * wp + 3 * h * w + 3 * 128)
    vmem_limit = int(min(64 * 2**20, max(32 * 2**20, 8 * block_bytes)))

    return pl.pallas_call(
        kernel,
        out_shape=(jax.ShapeDtypeStruct((n, 3, h, w), jnp.float32),
                   jax.ShapeDtypeStruct((n, 3, 128), jnp.float32)),
        grid=(n,),
        in_specs=[pl.BlockSpec((1, hp, wp), lambda i: (i, 0, 0))],
        out_specs=(pl.BlockSpec((1, 3, h, w), lambda i: (i, 0, 0, 0)),
                   pl.BlockSpec((1, 3, 128), lambda i: (i, 0, 0))),
        compiler_params=pltpu.CompilerParams(
            dimension_semantics=("parallel",),
            vmem_limit_bytes=vmem_limit),
    )(xpad)


# ----------------------------------------------------------------------------
# Pass 2: apply the batch-global normalization  y = x * (2 / max) - 1.
# ----------------------------------------------------------------------------
def _normalize_kernel(scale_ref, x_ref, o_ref):
    """scale_ref: (3,) f32 in SMEM, scale[j] = 2 / global_max_j
       x_ref/o_ref: (1, 3, H, W) f32 (same HBM buffer via aliasing)."""
    for j in range(3):
        o_ref[0, j, :, :] = x_ref[0, j, :, :] * scale_ref[j] - 1.0


def _run_pass2(scale, unnorm, n, h, w):
    block_bytes = 4 * 2 * 3 * h * w
    vmem_limit = int(min(64 * 2**20, max(32 * 2**20, 8 * block_bytes)))
    return pl.pallas_call(
        _normalize_kernel,
        out_shape=jax.ShapeDtypeStruct((n, 3, h, w), jnp.float32),
        grid=(n,),
        in_specs=[pl.BlockSpec(memory_space=pltpu.MemorySpace.SMEM),
                  pl.BlockSpec((1, 3, h, w), lambda i: (i, 0, 0, 0))],
        out_specs=pl.BlockSpec((1, 3, h, w), lambda i: (i, 0, 0, 0)),
        input_output_aliases={1: 0},   # normalize in place (no extra HBM buf)
        compiler_params=pltpu.CompilerParams(
            dimension_semantics=("parallel",),
            vmem_limit_bytes=vmem_limit),
    )(scale, unnorm)


# ----------------------------------------------------------------------------
# ThreeSobelFilter.forward(): [N, 1, H, W] -> [N, 3, H, W]
# ----------------------------------------------------------------------------
@jax.jit
def three_sobel_filter(x_nchw):
    n, c, h, w = x_nchw.shape
    assert c == 1, "SobelFilter's [1,1,k,k] conv kernel requires 1 input channel"
    x = x_nchw[:, 0].astype(jnp.float32)                       # [N, H, W]
    xpad = jnp.pad(x, ((0, 0), (_PAD, _PAD), (_PAD, _PAD)), mode="edge")

    unnorm, maxes_lanes = _run_pass1(xpad, n, h, w)            # [N,3,H,W], [N,3,128]
    maxes = jnp.max(maxes_lanes, axis=(0, 2))                  # (3,) global per-filter max
    scale = (2.0 / maxes).astype(jnp.float32)                  # fold (x/m-0.5)/0.5 -> x*(2/m)-1
    return _run_pass2(scale, unnorm, n, h, w)                  # [N, 3, H, W]


# ----------------------------------------------------------------------------
# Pure-JAX reference (direct k x k cross-correlation) for a sanity check.
# ----------------------------------------------------------------------------
def _reference(x_nchw):
    outs = []
    n, _, hh, ww = x_nchw.shape
    for k in _KSIZES:
        X, Wt = _SOBEL_TAPS[k]
        kx = jnp.outer(jnp.asarray(Wt, jnp.float32), jnp.asarray(X, jnp.float32))
        ky = kx.T
        p = k // 2
        xpad = jnp.pad(x_nchw[:, 0], ((0, 0), (p, p), (p, p)), mode="edge")
        sx = jnp.zeros((n, hh, ww), jnp.float32)
        sy = jnp.zeros((n, hh, ww), jnp.float32)
        for a in range(k):
            for b in range(k):
                patch = xpad[:, a:a + hh, b:b + ww]
                sx = sx + kx[a, b] * patch
                sy = sy + ky[a, b] * patch
        s = (jnp.abs(sx) + jnp.abs(sy)) * 0.5
        s = (s / jnp.max(s) - 0.5) / 0.5
        outs.append(s)
    return jnp.stack(outs, axis=1)


if __name__ == "__main__":
    key = jax.random.PRNGKey(0)
    N, C, H, W = 2, 1, 16, 16            # C must be 1 (see layout comment)
    x = jax.random.normal(key, (N, C, H, W), dtype=jnp.float32)

    out = jax.block_until_ready(three_sobel_filter(x))
    assert out.shape == (N, 3, H, W), out.shape

    ref = jax.block_until_ready(_reference(x))
    np.testing.assert_allclose(np.asarray(out), np.asarray(ref),
                               rtol=1e-4, atol=1e-4)
    print("KERNEL_OK")
</pallas_src>

<mosaic_0001>
module attributes {stable_mosaic.version = 11 : i64} {
  func.func @_sobel_pass1_kernel(%arg0: i32, %arg1: memref<1x22x22xf32, #tpu.memory_space<vmem>>, %arg2: memref<1x3x16x16xf32, #tpu.memory_space<vmem>>, %arg3: memref<1x3x128xf32, #tpu.memory_space<vmem>>) attributes {dimension_semantics = [#tpu.dimension_semantics<parallel>], iteration_bounds = array<i64: 2>, scalar_prefetch = 0 : i64, scratch_operands = 0 : i64, tpu.core_type = #tpu.core_type<tc>, window_params = [{transform_indices = @transform_0, window_bounds = array<i64: 1, 22, 22>}, {transform_indices = @transform_1, window_bounds = array<i64: 1, 3, 16, 16>}, {transform_indices = @transform_2, window_bounds = array<i64: 1, 3, 128>}]} {
    %c0 = arith.constant 0 : index
    %c0_0 = arith.constant 0 : index
    %c0_1 = arith.constant 0 : index
    %0 = vector.load %arg1[%c0, %c0_0, %c0_1] : memref<1x22x22xf32, #tpu.memory_space<vmem>>, vector<1x22x22xf32>
    %1 = vector.shape_cast %0 : vector<1x22x22xf32> to vector<22x22xf32>
    %2 = vector.extract_strided_slice %1 {offsets = [2, 2], sizes = [18, 16], strides = [1, 1]} : vector<22x22xf32> to vector<18x16xf32>
    %cst = arith.constant 1.000000e+00 : f32
    %3 = vector.broadcast %cst : f32 to vector<18x16xf32>
    %4 = arith.mulf %2, %3 : vector<18x16xf32>
    %cst_2 = arith.constant -1.000000e+00 : f32
    %5 = vector.broadcast %cst_2 : f32 to vector<18x16xf32>
    %6 = arith.mulf %2, %5 : vector<18x16xf32>
    %7 = vector.extract_strided_slice %1 {offsets = [2, 3], sizes = [18, 16], strides = [1, 1]} : vector<22x22xf32> to vector<18x16xf32>
    %cst_3 = arith.constant 2.000000e+00 : f32
    %8 = vector.broadcast %cst_3 : f32 to vector<18x16xf32>
    %9 = arith.mulf %7, %8 : vector<18x16xf32>
    %10 = arith.addf %4, %9 : vector<18x16xf32>
    %11 = vector.extract_strided_slice %1 {offsets = [2, 4], sizes = [18, 16], strides = [1, 1]} : vector<22x22xf32> to vector<18x16xf32>
    %cst_4 = arith.constant 1.000000e+00 : f32
    %12 = vector.broadcast %cst_4 : f32 to vector<18x16xf32>
    %13 = arith.mulf %11, %12 : vector<18x16xf32>
    %14 = arith.addf %10, %13 : vector<18x16xf32>
    %cst_5 = arith.constant 1.000000e+00 : f32
    %15 = vector.broadcast %cst_5 : f32 to vector<18x16xf32>
    %16 = arith.mulf %11, %15 : vector<18x16xf32>
    %17 = arith.addf %6, %16 : vector<18x16xf32>
    %18 = vector.extract_strided_slice %14 {offsets = [0, 0], sizes = [16, 16], strides = [1, 1]} : vector<18x16xf32> to vector<16x16xf32>
    %cst_6 = arith.constant -1.000000e+00 : f32
    %19 = vector.broadcast %cst_6 : f32 to vector<16x16xf32>
    %20 = arith.mulf %18, %19 : vector<16x16xf32>
    %21 = vector.extract_strided_slice %17 {offsets = [0, 0], sizes = [16, 16], strides = [1, 1]} : vector<18x16xf32> to vector<16x16xf32>
    %cst_7 = arith.constant 1.000000e+00 : f32
    %22 = vector.broadcast %cst_7 : f32 to vector<16x16xf32>
    %23 = arith.mulf %21, %22 : vector<16x16xf32>
    %24 = vector.extract_strided_slice %17 {offsets = [1, 0], sizes = [16, 16], strides = [1, 1]} : vector<18x16xf32> to vector<16x16xf32>
    %cst_8 = arith.constant 2.000000e+00 : f32
    %25 = vector.broadcast %cst_8 : f32 to vector<16x16xf32>
    %26 = arith.mulf %24, %25 : vector<16x16xf32>
    %27 = arith.addf %23, %26 : vector<16x16xf32>
    %28 = vector.extract_strided_slice %14 {offsets = [2, 0], sizes = [16, 16], strides = [1, 1]} : vector<18x16xf32> to vector<16x16xf32>
    %cst_9 = arith.constant 1.000000e+00 : f32
    %29 = vector.broadcast %cst_9 : f32 to vector<16x16xf32>
    %30 = arith.mulf %28, %29 : vector<16x16xf32>
    %31 = arith.addf %20, %30 : vector<16x16xf32>
    %32 = vector.extract_strided_slice %17 {offsets = [2, 0], sizes = [16, 16], strides = [1, 1]} : vector<18x16xf32> to vector<16x16xf32>
    %cst_10 = arith.constant 1.000000e+00 : f32
    %33 = vector.broadcast %cst_10 : f32 to vector<16x16xf32>
    %34 = arith.mulf %32, %33 : vector<16x16xf32>
    %35 = arith.addf %27, %34 : vector<16x16xf32>
    %36 = math.absf %31 : vector<16x16xf32>
    %37 = math.absf %35 : vector<16x16xf32>
    %38 = arith.addf %36, %37 : vector<16x16xf32>
    %cst_11 = arith.constant 5.000000e-01 : f32
    %39 = vector.broadcast %cst_11 : f32 to vector<16x16xf32>
    %40 = arith.mulf %38, %39 : vector<16x16xf32>
    %c0_12 = arith.constant 0 : index
    %c0_13 = arith.constant 0 : index
    %c0_14 = arith.constant 0 : index
    %c0_15 = arith.constant 0 : index
    %41 = vector.load %arg2[%c0_12, %c0_13, %c0_14, %c0_15] : memref<1x3x16x16xf32, #tpu.memory_space<vmem>>, vector<1x1x16x16xf32>
    %42 = vector.shape_cast %41 : vector<1x1x16x16xf32> to vector<16x16xf32>
    %43 = vector.shape_cast %40 : vector<16x16xf32> to vector<1x1x16x16xf32>
    tpu.vector_store %arg2[%c0_12, %c0_13, %c0_14, %c0_15], %43 {strides = array<i32>} : memref<1x3x16x16xf32, #tpu.memory_space<vmem>>, vector<1x1x16x16xf32>,
    %44 = vector.shape_cast %40 : vector<16x16xf32> to vector<1x16x16xf32>
    %cst_16 = arith.constant dense<0xFF800000> : vector<1xf32>
    %45 = vector.multi_reduction <maximumf>, %44, %cst_16 [1, 2] : vector<1x16x16xf32> to vector<1xf32>
    %46 = vector.shape_cast %45 : vector<1xf32> to vector<1x1x1xf32>
    %47 = vector.extract %46[0, 0, 0] : f32 from vector<1x1x1xf32>
    %48 = vector.broadcast %47 : f32 to vector<1x128xf32>
    %c0_17 = arith.constant 0 : index
    %c0_18 = arith.constant 0 : index
    %c0_19 = arith.constant 0 : index
    %49 = vector.load %arg3[%c0_17, %c0_18, %c0_19] : memref<1x3x128xf32, #tpu.memory_space<vmem>>, vector<1x1x128xf32>
    %50 = vector.shape_cast %49 : vector<1x1x128xf32> to vector<1x128xf32>
    %51 = vector.shape_cast %48 : vector<1x128xf32> to vector<1x1x128xf32>
    tpu.vector_store %arg3[%c0_17, %c0_18, %c0_19], %51 {strides = array<i32>} : memref<1x3x128xf32, #tpu.memory_space<vmem>>, vector<1x1x128xf32>,
    %52 = vector.extract_strided_slice %1 {offsets = [1, 1], sizes = [20, 16], strides = [1, 1]} : vector<22x22xf32> to vector<20x16xf32>
    %cst_20 = arith.constant 1.000000e+00 : f32
    %53 = vector.broadcast %cst_20 : f32 to vector<20x16xf32>
    %54 = arith.mulf %52, %53 : vector<20x16xf32>
    %cst_21 = arith.constant -1.000000e+00 : f32
    %55 = vector.broadcast %cst_21 : f32 to vector<20x16xf32>
    %56 = arith.mulf %52, %55 : vector<20x16xf32>
    %57 = vector.extract_strided_slice %1 {offsets = [1, 2], sizes = [20, 16], strides = [1, 1]} : vector<22x22xf32> to vector<20x16xf32>
    %cst_22 = arith.constant 4.000000e+00 : f32
    %58 = vector.broadcast %cst_22 : f32 to vector<20x16xf32>
    %59 = arith.mulf %57, %58 : vector<20x16xf32>
    %60 = arith.addf %54, %59 : vector<20x16xf32>
    %cst_23 = arith.constant -2.000000e+00 : f32
    %61 = vector.broadcast %cst_23 : f32 to vector<20x16xf32>
    %62 = arith.mulf %57, %61 : vector<20x16xf32>
    %63 = arith.addf %56, %62 : vector<20x16xf32>
    %64 = vector.extract_strided_slice %1 {offsets = [1, 3], sizes = [20, 16], strides = [1, 1]} : vector<22x22xf32> to vector<20x16xf32>
    %cst_24 = arith.constant 6.000000e+00 : f32
    %65 = vector.broadcast %cst_24 : f32 to vector<20x16xf32>
    %66 = arith.mulf %64, %65 : vector<20x16xf32>
    %67 = arith.addf %60, %66 : vector<20x16xf32>
    %68 = vector.extract_strided_slice %1 {offsets = [1, 4], sizes = [20, 16], strides = [1, 1]} : vector<22x22xf32> to vector<20x16xf32>
    %cst_25 = arith.constant 4.000000e+00 : f32
    %69 = vector.broadcast %cst_25 : f32 to vector<20x16xf32>
    %70 = arith.mulf %68, %69 : vector<20x16xf32>
    %71 = arith.addf %67, %70 : vector<20x16xf32>
    %cst_26 = arith.constant 2.000000e+00 : f32
    %72 = vector.broadcast %cst_26 : f32 to vector<20x16xf32>
    %73 = arith.mulf %68, %72 : vector<20x16xf32>
    %74 = arith.addf %63, %73 : vector<20x16xf32>
    %75 = vector.extract_strided_slice %1 {offsets = [1, 5], sizes = [20, 16], strides = [1, 1]} : vector<22x22xf32> to vector<20x16xf32>
    %cst_27 = arith.constant 1.000000e+00 : f32
    %76 = vector.broadcast %cst_27 : f32 to vector<20x16xf32>
    %77 = arith.mulf %75, %76 : vector<20x16xf32>
    %78 = arith.addf %71, %77 : vector<20x16xf32>
    %cst_28 = arith.constant 1.000000e+00 : f32
    %79 = vector.broadcast %cst_28 : f32 to vector<20x16xf32>
    %80 = arith.mulf %75, %79 : vector<20x16xf32>
    %81 = arith.addf %74, %80 : vector<20x16xf32>
    %82 = vector.extract_strided_slice %78 {offsets = [0, 0], sizes = [16, 16], strides = [1, 1]} : vector<20x16xf32> to vector<16x16xf32>
    %cst_29 = arith.constant -1.000000e+00 : f32
    %83 = vector.broadcast %cst_29 : f32 to vector<16x16xf32>
    %84 = arith.mulf %82, %83 : vector<16x16xf32>
    %85 = vector.extract_strided_slice %81 {offsets = [0, 0], sizes = [16, 16], strides = [1, 1]} : vector<20x16xf32> to vector<16x16xf32>
    %cst_30 = arith.constant 1.000000e+00 : f32
    %86 = vector.broadcast %cst_30 : f32 to vector<16x16xf32>
    %87 = arith.mulf %85, %86 : vector<16x16xf32>
    %88 = vector.extract_strided_slice %78 {offsets = [1, 0], sizes = [16, 16], strides = [1, 1]} : vector<20x16xf32> to vector<16x16xf32>
    %cst_31 = arith.constant -2.000000e+00 : f32
    %89 = vector.broadcast %cst_31 : f32 to vector<16x16xf32>
    %90 = arith.mulf %88, %89 : vector<16x16xf32>
    %91 = arith.addf %84, %90 : vector<16x16xf32>
    %92 = vector.extract_strided_slice %81 {offsets = [1, 0], sizes = [16, 16], strides = [1, 1]} : vector<20x16xf32> to vector<16x16xf32>
    %cst_32 = arith.constant 4.000000e+00 : f32
    %93 = vector.broadcast %cst_32 : f32 to vector<16x16xf32>
    %94 = arith.mulf %92, %93 : vector<16x16xf32>
    %95 = arith.addf %87, %94 : vector<16x16xf32>
    %96 = vector.extract_strided_slice %81 {offsets = [2, 0], sizes = [16, 16], strides = [1, 1]} : vector<20x16xf32> to vector<16x16xf32>
    %cst_33 = arith.constant 6.000000e+00 : f32
    %97 = vector.broadcast %cst_33 : f32 to vector<16x16xf32>
    %98 = arith.mulf %96, %97 : vector<16x16xf32>
    %99 = arith.addf %95, %98 : vector<16x16xf32>
    %100 = vector.extract_strided_slice %78 {offsets = [3, 0], sizes = [16, 16], strides = [1, 1]} : vector<20x16xf32> to vector<16x16xf32>
    %cst_34 = arith.constant 2.000000e+00 : f32
    %101 = vector.broadcast %cst_34 : f32 to vector<16x16xf32>
    %102 = arith.mulf %100, %101 : vector<16x16xf32>
    %103 = arith.addf %91, %102 : vector<16x16xf32>
    %104 = vector.extract_strided_slice %81 {offsets = [3, 0], sizes = [16, 16], strides = [1, 1]} : vector<20x16xf32> to vector<16x16xf32>
    %cst_35 = arith.constant 4.000000e+00 : f32
    %105 = vector.broadcast %cst_35 : f32 to vector<16x16xf32>
    %106 = arith.mulf %104, %105 : vector<16x16xf32>
    %107 = arith.addf %99, %106 : vector<16x16xf32>
    %108 = vector.extract_strided_slice %78 {offsets = [4, 0], sizes = [16, 16], strides = [1, 1]} : vector<20x16xf32> to vector<16x16xf32>
    %cst_36 = arith.constant 1.000000e+00 : f32
    %109 = vector.broadcast %cst_36 : f32 to vector<16x16xf32>
    %110 = arith.mulf %108, %109 : vector<16x16xf32>
    %111 = arith.addf %103, %110 : vector<16x16xf32>
    %112 = vector.extract_strided_slice %81 {offsets = [4, 0], sizes = [16, 16], strides = [1, 1]} : vector<20x16xf32> to vector<16x16xf32>
    %cst_37 = arith.constant 1.000000e+00 : f32
    %113 = vector.broadcast %cst_37 : f32 to vector<16x16xf32>
    %114 = arith.mulf %112, %113 : vector<16x16xf32>
    %115 = arith.addf %107, %114 : vector<16x16xf32>
    %116 = math.absf %111 : vector<16x16xf32>
    %117 = math.absf %115 : vector<16x16xf32>
    %118 = arith.addf %116, %117 : vector<16x16xf32>
    %cst_38 = arith.constant 5.000000e-01 : f32
    %119 = vector.broadcast %cst_38 : f32 to vector<16x16xf32>
    %120 = arith.mulf %118, %119 : vector<16x16xf32>
    %c0_39 = arith.constant 0 : index
    %c1 = arith.constant 1 : index
    %c0_40 = arith.constant 0 : index
    %c0_41 = arith.constant 0 : index
    %121 = vector.load %arg2[%c0_39, %c1, %c0_40, %c0_41] : memref<1x3x16x16xf32, #tpu.memory_space<vmem>>, vector<1x1x16x16xf32>
    %122 = vector.shape_cast %121 : vector<1x1x16x16xf32> to vector<16x16xf32>
    %123 = vector.shape_cast %120 : vector<16x16xf32> to vector<1x1x16x16xf32>
    tpu.vector_store %arg2[%c0_39, %c1, %c0_40, %c0_41], %123 {strides = array<i32>} : memref<1x3x16x16xf32, #tpu.memory_space<vmem>>, vector<1x1x16x16xf32>,
    %124 = vector.shape_cast %120 : vector<16x16xf32> to vector<1x16x16xf32>
    %cst_42 = arith.constant dense<0xFF800000> : vector<1xf32>
    %125 = vector.multi_reduction <maximumf>, %124, %cst_42 [1, 2] : vector<1x16x16xf32> to vector<1xf32>
    %126 = vector.shape_cast %125 : vector<1xf32> to vector<1x1x1xf32>
    %127 = vector.extract %126[0, 0, 0] : f32 from vector<1x1x1xf32>
    %128 = vector.broadcast %127 : f32 to vector<1x128xf32>
    %c0_43 = arith.constant 0 : index
    %c1_44 = arith.constant 1 : index
    %c0_45 = arith.constant 0 : index
    %129 = vector.load %arg3[%c0_43, %c1_44, %c0_45] : memref<1x3x128xf32, #tpu.memory_space<vmem>>, vector<1x1x128xf32>
    %130 = vector.shape_cast %129 : vector<1x1x128xf32> to vector<1x128xf32>
    %131 = vector.shape_cast %128 : vector<1x128xf32> to vector<1x1x128xf32>
    tpu.vector_store %arg3[%c0_43, %c1_44, %c0_45], %131 {strides = array<i32>} : memref<1x3x128xf32, #tpu.memory_space<vmem>>, vector<1x1x128xf32>,
    %132 = vector.extract_strided_slice %1 {offsets = [0, 0], sizes = [22, 16], strides = [1, 1]} : vector<22x22xf32> to vector<22x16xf32>
    %cst_46 = arith.constant 1.000000e+00 : f32
    %133 = vector.broadcast %cst_46 : f32 to vector<22x16xf32>
    %134 = arith.mulf %132, %133 : vector<22x16xf32>
    %cst_47 = arith.constant -1.000000e+00 : f32
    %135 = vector.broadcast %cst_47 : f32 to vector<22x16xf32>
    %136 = arith.mulf %132, %135 : vector<22x16xf32>
    %137 = vector.extract_strided_slice %1 {offsets = [0, 1], sizes = [22, 16], strides = [1, 1]} : vector<22x22xf32> to vector<22x16xf32>
    %cst_48 = arith.constant 6.000000e+00 : f32
    %138 = vector.broadcast %cst_48 : f32 to vector<22x16xf32>
    %139 = arith.mulf %137, %138 : vector<22x16xf32>
    %140 = arith.addf %134, %139 : vector<22x16xf32>
    %cst_49 = arith.constant -2.000000e+00 : f32
    %141 = vector.broadcast %cst_49 : f32 to vector<22x16xf32>
    %142 = arith.mulf %137, %141 : vector<22x16xf32>
    %143 = arith.addf %136, %142 : vector<22x16xf32>
    %144 = vector.extract_strided_slice %1 {offsets = [0, 2], sizes = [22, 16], strides = [1, 1]} : vector<22x22xf32> to vector<22x16xf32>
    %cst_50 = arith.constant 1.500000e+01 : f32
    %145 = vector.broadcast %cst_50 : f32 to vector<22x16xf32>
    %146 = arith.mulf %144, %145 : vector<22x16xf32>
    %147 = arith.addf %140, %146 : vector<22x16xf32>
    %cst_51 = arith.constant -3.000000e+00 : f32
    %148 = vector.broadcast %cst_51 : f32 to vector<22x16xf32>
    %149 = arith.mulf %144, %148 : vector<22x16xf32>
    %150 = arith.addf %143, %149 : vector<22x16xf32>
    %151 = vector.extract_strided_slice %1 {offsets = [0, 3], sizes = [22, 16], strides = [1, 1]} : vector<22x22xf32> to vector<22x16xf32>
    %cst_52 = arith.constant 2.000000e+01 : f32
    %152 = vector.broadcast %cst_52 : f32 to vector<22x16xf32>
    %153 = arith.mulf %151, %152 : vector<22x16xf32>
    %154 = arith.addf %147, %153 : vector<22x16xf32>
    %155 = vector.extract_strided_slice %1 {offsets = [0, 4], sizes = [22, 16], strides = [1, 1]} : vector<22x22xf32> to vector<22x16xf32>
    %cst_53 = arith.constant 1.500000e+01 : f32
    %156 = vector.broadcast %cst_53 : f32 to vector<22x16xf32>
    %157 = arith.mulf %155, %156 : vector<22x16xf32>
    %158 = arith.addf %154, %157 : vector<22x16xf32>
    %cst_54 = arith.constant 3.000000e+00 : f32
    %159 = vector.broadcast %cst_54 : f32 to vector<22x16xf32>
    %160 = arith.mulf %155, %159 : vector<22x16xf32>
    %161 = arith.addf %150, %160 : vector<22x16xf32>
    %162 = vector.extract_strided_slice %1 {offsets = [0, 5], sizes = [22, 16], strides = [1, 1]} : vector<22x22xf32> to vector<22x16xf32>
    %cst_55 = arith.constant 6.000000e+00 : f32
    %163 = vector.broadcast %cst_55 : f32 to vector<22x16xf32>
    %164 = arith.mulf %162, %163 : vector<22x16xf32>
    %165 = arith.addf %158, %164 : vector<22x16xf32>
    %cst_56 = arith.constant 2.000000e+00 : f32
    %166 = vector.broadcast %cst_56 : f32 to vector<22x16xf32>
    %167 = arith.mulf %162, %166 : vector<22x16xf32>
    %168 = arith.addf %161, %167 : vector<22x16xf32>
    %169 = vector.extract_strided_slice %1 {offsets = [0, 6], sizes = [22, 16], strides = [1, 1]} : vector<22x22xf32> to vector<22x16xf32>
    %cst_57 = arith.constant 1.000000e+00 : f32
    %170 = vector.broadcast %cst_57 : f32 to vector<22x16xf32>
    %171 = arith.mulf %169, %170 : vector<22x16xf32>
    %172 = arith.addf %165, %171 : vector<22x16xf32>
    %cst_58 = arith.constant 1.000000e+00 : f32
    %173 = vector.broadcast %cst_58 : f32 to vector<22x16xf32>
    %174 = arith.mulf %169, %173 : vector<22x16xf32>
    %175 = arith.addf %168, %174 : vector<22x16xf32>
    %176 = vector.extract_strided_slice %172 {offsets = [0, 0], sizes = [16, 16], strides = [1, 1]} : vector<22x16xf32> to vector<16x16xf32>
    %cst_59 = arith.constant -1.000000e+00 : f32
    %177 = vector.broadcast %cst_59 : f32 to vector<16x16xf32>
    %178 = arith.mulf %176, %177 : vector<16x16xf32>
    %179 = vector.extract_strided_slice %175 {offsets = [0, 0], sizes = [16, 16], strides = [1, 1]} : vector<22x16xf32> to vector<16x16xf32>
    %cst_60 = arith.constant 1.000000e+00 : f32
    %180 = vector.broadcast %cst_60 : f32 to vector<16x16xf32>
    %181 = arith.mulf %179, %180 : vector<16x16xf32>
    %182 = vector.extract_strided_slice %172 {offsets = [1, 0], sizes = [16, 16], strides = [1, 1]} : vector<22x16xf32> to vector<16x16xf32>
    %cst_61 = arith.constant -2.000000e+00 : f32
    %183 = vector.broadcast %cst_61 : f32 to vector<16x16xf32>
    %184 = arith.mulf %182, %183 : vector<16x16xf32>
    %185 = arith.addf %178, %184 : vector<16x16xf32>
    %186 = vector.extract_strided_slice %175 {offsets = [1, 0], sizes = [16, 16], strides = [1, 1]} : vector<22x16xf32> to vector<16x16xf32>
    %cst_62 = arith.constant 6.000000e+00 : f32
    %187 = vector.broadcast %cst_62 : f32 to vector<16x16xf32>
    %188 = arith.mulf %186, %187 : vector<16x16xf32>
    %189 = arith.addf %181, %188 : vector<16x16xf32>
    %190 = vector.extract_strided_slice %172 {offsets = [2, 0], sizes = [16, 16], strides = [1, 1]} : vector<22x16xf32> to vector<16x16xf32>
    %cst_63 = arith.constant -3.000000e+00 : f32
    %191 = vector.broadcast %cst_63 : f32 to vector<16x16xf32>
    %192 = arith.mulf %190, %191 : vector<16x16xf32>
    %193 = arith.addf %185, %192 : vector<16x16xf32>
    %194 = vector.extract_strided_slice %175 {offsets = [2, 0], sizes = [16, 16], strides = [1, 1]} : vector<22x16xf32> to vector<16x16xf32>
    %cst_64 = arith.constant 1.500000e+01 : f32
    %195 = vector.broadcast %cst_64 : f32 to vector<16x16xf32>
    %196 = arith.mulf %194, %195 : vector<16x16xf32>
    %197 = arith.addf %189, %196 : vector<16x16xf32>
    %198 = vector.extract_strided_slice %175 {offsets = [3, 0], sizes = [16, 16], strides = [1, 1]} : vector<22x16xf32> to vector<16x16xf32>
    %cst_65 = arith.constant 2.000000e+01 : f32
    %199 = vector.broadcast %cst_65 : f32 to vector<16x16xf32>
    %200 = arith.mulf %198, %199 : vector<16x16xf32>
    %201 = arith.addf %197, %200 : vector<16x16xf32>
    %202 = vector.extract_strided_slice %172 {offsets = [4, 0], sizes = [16, 16], strides = [1, 1]} : vector<22x16xf32> to vector<16x16xf32>
    %cst_66 = arith.constant 3.000000e+00 : f32
    %203 = vector.broadcast %cst_66 : f32 to vector<16x16xf32>
    %204 = arith.mulf %202, %203 : vector<16x16xf32>
    %205 = arith.addf %193, %204 : vector<16x16xf32>
    %206 = vector.extract_strided_slice %175 {offsets = [4, 0], sizes = [16, 16], strides = [1, 1]} : vector<22x16xf32> to vector<16x16xf32>
    %cst_67 = arith.constant 1.500000e+01 : f32
    %207 = vector.broadcast %cst_67 : f32 to vector<16x16xf32>
    %208 = arith.mulf %206, %207 : vector<16x16xf32>
    %209 = arith.addf %201, %208 : vector<16x16xf32>
    %210 = vector.extract_strided_slice %172 {offsets = [5, 0], sizes = [16, 16], strides = [1, 1]} : vector<22x16xf32> to vector<16x16xf32>
    %cst_68 = arith.constant 2.000000e+00 : f32
    %211 = vector.broadcast %cst_68 : f32 to vector<16x16xf32>
    %212 = arith.mulf %210, %211 : vector<16x16xf32>
    %213 = arith.addf %205, %212 : vector<16x16xf32>
    %214 = vector.extract_strided_slice %175 {offsets = [5, 0], sizes = [16, 16], strides = [1, 1]} : vector<22x16xf32> to vector<16x16xf32>
    %cst_69 = arith.constant 6.000000e+00 : f32
    %215 = vector.broadcast %cst_69 : f32 to vector<16x16xf32>
    %216 = arith.mulf %214, %215 : vector<16x16xf32>
    %217 = arith.addf %209, %216 : vector<16x16xf32>
    %218 = vector.extract_strided_slice %172 {offsets = [6, 0], sizes = [16, 16], strides = [1, 1]} : vector<22x16xf32> to vector<16x16xf32>
    %cst_70 = arith.constant 1.000000e+00 : f32
    %219 = vector.broadcast %cst_70 : f32 to vector<16x16xf32>
    %220 = arith.mulf %218, %219 : vector<16x16xf32>
    %221 = arith.addf %213, %220 : vector<16x16xf32>
    %222 = vector.extract_strided_slice %175 {offsets = [6, 0], sizes = [16, 16], strides = [1, 1]} : vector<22x16xf32> to vector<16x16xf32>
    %cst_71 = arith.constant 1.000000e+00 : f32
    %223 = vector.broadcast %cst_71 : f32 to vector<16x16xf32>
    %224 = arith.mulf %222, %223 : vector<16x16xf32>
    %225 = arith.addf %217, %224 : vector<16x16xf32>
    %226 = math.absf %221 : vector<16x16xf32>
    %227 = math.absf %225 : vector<16x16xf32>
    %228 = arith.addf %226, %227 : vector<16x16xf32>
    %cst_72 = arith.constant 5.000000e-01 : f32
    %229 = vector.broadcast %cst_72 : f32 to vector<16x16xf32>
    %230 = arith.mulf %228, %229 : vector<16x16xf32>
    %c0_73 = arith.constant 0 : index
    %c2 = arith.constant 2 : index
    %c0_74 = arith.constant 0 : index
    %c0_75 = arith.constant 0 : index
    %231 = vector.load %arg2[%c0_73, %c2, %c0_74, %c0_75] : memref<1x3x16x16xf32, #tpu.memory_space<vmem>>, vector<1x1x16x16xf32>
    %232 = vector.shape_cast %231 : vector<1x1x16x16xf32> to vector<16x16xf32>
    %233 = vector.shape_cast %230 : vector<16x16xf32> to vector<1x1x16x16xf32>
    tpu.vector_store %arg2[%c0_73, %c2, %c0_74, %c0_75], %233 {strides = array<i32>} : memref<1x3x16x16xf32, #tpu.memory_space<vmem>>, vector<1x1x16x16xf32>,
    %234 = vector.shape_cast %230 : vector<16x16xf32> to vector<1x16x16xf32>
    %cst_76 = arith.constant dense<0xFF800000> : vector<1xf32>
    %235 = vector.multi_reduction <maximumf>, %234, %cst_76 [1, 2] : vector<1x16x16xf32> to vector<1xf32>
    %236 = vector.shape_cast %235 : vector<1xf32> to vector<1x1x1xf32>
    %237 = vector.extract %236[0, 0, 0] : f32 from vector<1x1x1xf32>
    %238 = vector.broadcast %237 : f32 to vector<1x128xf32>
    %c0_77 = arith.constant 0 : index
    %c2_78 = arith.constant 2 : index
    %c0_79 = arith.constant 0 : index
    %239 = vector.load %arg3[%c0_77, %c2_78, %c0_79] : memref<1x3x128xf32, #tpu.memory_space<vmem>>, vector<1x1x128xf32>
    %240 = vector.shape_cast %239 : vector<1x1x128xf32> to vector<1x128xf32>
    %241 = vector.shape_cast %238 : vector<1x128xf32> to vector<1x1x128xf32>
    tpu.vector_store %arg3[%c0_77, %c2_78, %c0_79], %241 {strides = array<i32>} : memref<1x3x128xf32, #tpu.memory_space<vmem>>, vector<1x1x128xf32>,
    return
  }
  func.func @transform_0(%arg0: i32) -> (i32, i32, i32) {
    %c0_i32 = arith.constant 0 : i32
    %c0_i32_0 = arith.constant 0 : i32
    %c0_i32_1 = arith.constant 0 : i32
    return %arg0, %c0_i32, %c0_i32_0 : i32, i32, i32
  }
  func.func @transform_1(%arg0: i32) -> (i32, i32, i32, i32) {
    %c0_i32 = arith.constant 0 : i32
    %c0_i32_0 = arith.constant 0 : i32
    %c0_i32_1 = arith.constant 0 : i32
    %c0_i32_2 = arith.constant 0 : i32
    return %arg0, %c0_i32, %c0_i32_0, %c0_i32_1 : i32, i32, i32, i32
  }
  func.func @transform_2(%arg0: i32) -> (i32, i32, i32) {
    %c0_i32 = arith.constant 0 : i32
    %c0_i32_0 = arith.constant 0 : i32
    %c0_i32_1 = arith.constant 0 : i32
    return %arg0, %c0_i32, %c0_i32_0 : i32, i32, i32
  }
}

module attributes {stable_mosaic.version = 11 : i64} {
  func.func @_normalize_kernel(%arg0: i32, %arg1: memref<3xf32, #tpu.memory_space<smem>>, %arg2: memref<1x3x16x16xf32, #tpu.memory_space<vmem>>, %arg3: memref<1x3x16x16xf32, #tpu.memory_space<vmem>>) attributes {dimension_semantics = [#tpu.dimension_semantics<parallel>], iteration_bounds = array<i64: 2>, scalar_prefetch = 0 : i64, scratch_operands = 0 : i64, tpu.core_type = #tpu.core_type<tc>, window_params = [{transform_indices = @transform_0, window_bounds = array<i64: 3>}, {transform_indices = @transform_1, window_bounds = array<i64: 1, 3, 16, 16>}, {transform_indices = @transform_2, window_bounds = array<i64: 1, 3, 16, 16>}]} {
    %c0 = arith.constant 0 : index
    %c0_0 = arith.constant 0 : index
    %c0_1 = arith.constant 0 : index
    %c0_2 = arith.constant 0 : index
    %0 = vector.load %arg2[%c0, %c0_0, %c0_1, %c0_2] : memref<1x3x16x16xf32, #tpu.memory_space<vmem>>, vector<1x1x16x16xf32>
    %1 = vector.shape_cast %0 : vector<1x1x16x16xf32> to vector<16x16xf32>
    %c0_3 = arith.constant 0 : index
    %2 = memref.load %arg1[%c0_3] : memref<3xf32, #tpu.memory_space<smem>>
    %3 = vector.broadcast %2 : f32 to vector<16x16xf32>
    %4 = arith.mulf %1, %3 : vector<16x16xf32>
    %cst = arith.constant 1.000000e+00 : f32
    %5 = vector.broadcast %cst : f32 to vector<16x16xf32>
    %6 = arith.subf %4, %5 : vector<16x16xf32>
    %c0_4 = arith.constant 0 : index
    %c0_5 = arith.constant 0 : index
    %c0_6 = arith.constant 0 : index
    %c0_7 = arith.constant 0 : index
    %7 = vector.load %arg3[%c0_4, %c0_5, %c0_6, %c0_7] : memref<1x3x16x16xf32, #tpu.memory_space<vmem>>, vector<1x1x16x16xf32>
    %8 = vector.shape_cast %7 : vector<1x1x16x16xf32> to vector<16x16xf32>
    %9 = vector.shape_cast %6 : vector<16x16xf32> to vector<1x1x16x16xf32>
    tpu.vector_store %arg3[%c0_4, %c0_5, %c0_6, %c0_7], %9 {strides = array<i32>} : memref<1x3x16x16xf32, #tpu.memory_space<vmem>>, vector<1x1x16x16xf32>,
    %c0_8 = arith.constant 0 : index
    %c1 = arith.constant 1 : index
    %c0_9 = arith.constant 0 : index
    %c0_10 = arith.constant 0 : index
    %10 = vector.load %arg2[%c0_8, %c1, %c0_9, %c0_10] : memref<1x3x16x16xf32, #tpu.memory_space<vmem>>, vector<1x1x16x16xf32>
    %11 = vector.shape_cast %10 : vector<1x1x16x16xf32> to vector<16x16xf32>
    %c1_11 = arith.constant 1 : index
    %12 = memref.load %arg1[%c1_11] : memref<3xf32, #tpu.memory_space<smem>>
    %13 = vector.broadcast %12 : f32 to vector<16x16xf32>
    %14 = arith.mulf %11, %13 : vector<16x16xf32>
    %cst_12 = arith.constant 1.000000e+00 : f32
    %15 = vector.broadcast %cst_12 : f32 to vector<16x16xf32>
    %16 = arith.subf %14, %15 : vector<16x16xf32>
    %c0_13 = arith.constant 0 : index
    %c1_14 = arith.constant 1 : index
    %c0_15 = arith.constant 0 : index
    %c0_16 = arith.constant 0 : index
    %17 = vector.load %arg3[%c0_13, %c1_14, %c0_15, %c0_16] : memref<1x3x16x16xf32, #tpu.memory_space<vmem>>, vector<1x1x16x16xf32>
    %18 = vector.shape_cast %17 : vector<1x1x16x16xf32> to vector<16x16xf32>
    %19 = vector.shape_cast %16 : vector<16x16xf32> to vector<1x1x16x16xf32>
    tpu.vector_store %arg3[%c0_13, %c1_14, %c0_15, %c0_16], %19 {strides = array<i32>} : memref<1x3x16x16xf32, #tpu.memory_space<vmem>>, vector<1x1x16x16xf32>,
    %c0_17 = arith.constant 0 : index
    %c2 = arith.constant 2 : index
    %c0_18 = arith.constant 0 : index
    %c0_19 = arith.constant 0 : index
    %20 = vector.load %arg2[%c0_17, %c2, %c0_18, %c0_19] : memref<1x3x16x16xf32, #tpu.memory_space<vmem>>, vector<1x1x16x16xf32>
    %21 = vector.shape_cast %20 : vector<1x1x16x16xf32> to vector<16x16xf32>
    %c2_20 = arith.constant 2 : index
    %22 = memref.load %arg1[%c2_20] : memref<3xf32, #tpu.memory_space<smem>>
    %23 = vector.broadcast %22 : f32 to vector<16x16xf32>
    %24 = arith.mulf %21, %23 : vector<16x16xf32>
    %cst_21 = arith.constant 1.000000e+00 : f32
    %25 = vector.broadcast %cst_21 : f32 to vector<16x16xf32>
    %26 = arith.subf %24, %25 : vector<16x16xf32>
    %c0_22 = arith.constant 0 : index
    %c2_23 = arith.constant 2 : index
    %c0_24 = arith.constant 0 : index
    %c0_25 = arith.constant 0 : index
    %27 = vector.load %arg3[%c0_22, %c2_23, %c0_24, %c0_25] : memref<1x3x16x16xf32, #tpu.memory_space<vmem>>, vector<1x1x16x16xf32>
    %28 = vector.shape_cast %27 : vector<1x1x16x16xf32> to vector<16x16xf32>
    %29 = vector.shape_cast %26 : vector<16x16xf32> to vector<1x1x16x16xf32>
    tpu.vector_store %arg3[%c0_22, %c2_23, %c0_24, %c0_25], %29 {strides = array<i32>} : memref<1x3x16x16xf32, #tpu.memory_space<vmem>>, vector<1x1x16x16xf32>,
    return
  }
  func.func @transform_0(%arg0: i32) -> i32 {
    %c0_i32 = arith.constant 0 : i32
    %c0_i32_0 = arith.constant 0 : i32
    return %c0_i32 : i32
  }
  func.func @transform_1(%arg0: i32) -> (i32, i32, i32, i32) {
    %c0_i32 = arith.constant 0 : i32
    %c0_i32_0 = arith.constant 0 : i32
    %c0_i32_1 = arith.constant 0 : i32
    %c0_i32_2 = arith.constant 0 : i32
    return %arg0, %c0_i32, %c0_i32_0, %c0_i32_1 : i32, i32, i32, i32
  }
  func.func @transform_2(%arg0: i32) -> (i32, i32, i32, i32) {
    %c0_i32 = arith.constant 0 : i32
    %c0_i32_0 = arith.constant 0 : i32
    %c0_i32_1 = arith.constant 0 : i32
    %c0_i32_2 = arith.constant 0 : i32
    return %arg0, %c0_i32, %c0_i32_0, %c0_i32_1 : i32, i32, i32, i32
  }
}

</mosaic_0001>

<bundles_post_ra>
// kernel: three_sobel_filter.3
= control target key start
LH: loop header
LB: loop body
LE: loop exit
PB: predicated region body
PF: predicated region fallthrough
CT: control target
= control target key end

     0   :  { %7 = vsyncpa [#allocation5], 0  ;;  %s735_s0 = inlined_call_operand.vmem [shape: f32[3], index: 0, kind: input, shape index: {}]   ;;  %s736_s1 = inlined_call_operand.hbm [shape: f32[2,3,16,16], index: 1, kind: input, shape index: {}, may-alias: {1,2}]   ;;  %s737_s2 = inlined_call_operand.hbm [shape: f32[2,3,16,16], index: 2, kind: output, shape index: {}, may-alias: {1,2}]  }
   0x1   :  { %8 = vsyncpa [#allocation3], 0 }
   0x2   :  { %10 = vsyncpa [#allocation3 + $0x1], 0 }
   0x3   :  { %11 = vsyncpa [#allocation4], 0 }
   0x4   :  { %13 = vsyncpa [#allocation4 + $0x1], 0  ;;  %s540_s9 = smov 0   ;;  %s542_s10 = smov 0  }
   0x5   :  { %s544_s11 = smov 0   ;;  %s546_s12 = smov 0  }
   0x6 LB: > { %s561_s13 = sadd.s32 4294967295, %s516_s12   ;;  %s310_s14 = sadd.s32 4294967294, %s516_s12   ;;  %s516_s12 = sphi %s546_s12, %s757_s12   ;;  %s512_s11 = sphi %s544_s11, %s756_s11   ;;  %s508_s10 = sphi %s542_s10, %s755_s10   ;;  %s504_s9 = sphi %s540_s9, %s754_s9  }
   0x7   : > { %s565_s15 = sadd.s32 1, %s516_s12   ;;  %s47_s16 = sadd.s32 1, %s512_s11 }
   0x8   : > { %s44_s17 = ssub.s32 %s516_s12, %s565_s15  ;;  %p54_p0 = scmp.ne.s32.totalorder %s512_s11, %s508_s10 }
   0x9   : > { %p45_p1 = scmp.eq.s32.totalorder %s44_s17, 0  ;;  %p55_p2 = scmp.eq.s32.totalorder %s516_s12, 0 }
   0xa   : > { %p60_p3 = scmp.ne.s32.totalorder %s508_s10, %s504_s9  ;;  %p739_p4 = scmp.eq.s32.totalorder %s561_s13, 0 }
   0xb   : > { %s577_s18 = scalar_select %p45_p1, %s512_s11, %s47_s16  }
   0xc   : > { %p579_p5 = por %p55_p2, %p54_p0  ;;  %p585_p6 = por %p739_p4, %p60_p3 }
   0xd   : > { %p84_p7 = scmp.eq.s32.totalorder %s561_s13, 1  ;;  %p90_p8 = scmp.eq.s32.totalorder %s310_s14, 1 }
   0xe   : > { %s742_s20 = scalar_select %p585_p6, 1, 0 }
   0xf   : > { %p311_p9 = scmp.ge.s32.totalorder %s516_s12, 1  ;;  %p97_p10 = scmp.lt.s32.totalorder %s516_s12, 3 }
  0x10   : > { %p592_p11 = por %p84_p7, %p54_p0  ;;  %p596_p12 = por %p90_p8, %p60_p3 }
  0x11   : > { %p600_p13 = pnand %p311_p9, %p97_p10  ;;  %s110_s26 = sshll.u32 %s735_s0, 4  ;;  %s111_s26 = int_to_ptr.vmem [resolvable:$true] %s110_s26 }
  0x12   : > { %s743_s21 = scalar_select %p592_p11, 1, 0 }
  0x13   : > { %s744_s22 = scalar_select %p596_p12, 1, 0 }
  0x14   : > { %p348_p1 = pneg %p600_p13  ;;  %p361_p2 = scmp.lt.s32.totalorder %s516_s12, 2 }
  0x15   : > { %s121_s28 = sand.u32 1, %s512_s11   ;;  %s401_s3 = scalar_lea.vmem %s111_s26, 16 }
  0x16   : > { %p613_p7 = pnand %p348_p1, %p739_p4  ;;  %p620_p3 = pnand %p361_p2, %p579_p5 }
  0x17   : > { %s336_s30 = smul.u32 48, %s121_s28  ;;  %p402_p8 = scmp.ne.s32.totalorder %s111_s26, %s401_s3 }
  0x18   : > { %p403_p9 = pneg %p613_p7  ;;  %p409_p12 = scmp.lt.s32.totalorder %s111_s26, %s111_s26 }
  0x19   : > { %p410_p11 = scmp.lt.s32.totalorder %s401_s3, %s401_s3 }
  0x1a   : > { %p404_p10 = pnand %p403_p9, %p402_p8 }
  0x1b   : > { %p411_p1 = por %p410_p11, %p409_p12 }
  0x1c   : > { %p405_p0 = pneg %p404_p10 }
  0x1e   : > { %p412_p4 = pnand %p411_p1, %p405_p0 }
  0x20   : > { %415 = shalt.err (!%p412_p4)
}
  0x21   : > { %s518_s4 = smov [#allocation2]   ;;  %s337_s5 = smul.u32 768, %s516_s12 }
  0x22   : > { %351 = dma.vmem_to_smem (!%p613_p7), %s111_s26, 16, %s518_s4, [#allocation5]  }
  0x23   : > { %s125_s6 = scalar_lea.vmem [#allocation6], %s336_s30  ;;  %s634_s16 = scalar_lea.hbm %s736_s1, %s337_s5 }
  0x24   : > { %s132_s7 = sshll.u32 %s125_s6, 4  ;;  %s636_s17 = scalar_lea.sflag [#allocation3], %s121_s28  ;;  %s629_s7 = int_to_ptr.vmem [resolvable:$true] %s132_s7 }
  0x25   : > { %s416_s19 = scalar_lea.hbm %s634_s16, 768  ;;  %p418_p5 = pneg %p620_p3 }
  0x26   : > { %p417_p4 = scmp.ne.s32.totalorder %s634_s16, %s416_s19  ;;  %s421_s26 = scalar_lea.hbm %s736_s1, 1536 }
  0x27   : > { %p422_p0 = scmp.lt.u32.totalorder %s634_s16, %s736_s1  ;;  %p423_p2 = scmp.lt.u32.totalorder %s421_s26, %s416_s19 }
  0x28   : > { %p419_p11 = pnand %p418_p5, %p417_p4  ;;  %p425_p8 = scmp.lt.u32.totalorder %s416_s19, %s634_s16 }
  0x29   : > { %p424_p7 = por %p423_p2, %p422_p0 }
  0x2a   : > { %p420_p12 = pneg %p419_p11 }
  0x2b   : > { %p426_p9 = por %p425_p8, %p424_p7 }
  0x2d   : > { %p427_p10 = pnand %p426_p9, %p420_p12 }
  0x2f   : > { %430 = shalt.err (!%p427_p10)
}
  0x30   : > { %s431_s28 = scalar_lea.vmem %s629_s7, 768  ;;  %s519_s3 = smov [#allocation6]  }
  0x31   : > { %p432_p1 = scmp.ne.s32.totalorder %s629_s7, %s431_s28  ;;  %s436_s4 = sshll.u32 %s519_s3, 4  ;;  %s437_s4 = int_to_ptr.vmem [resolvable:$false] %s436_s4 }
  0x32   : > { %s438_s5 = scalar_lea.vmem %s437_s4, 1536  ;;  %p439_p6 = scmp.lt.s32.totalorder %s629_s7, %s437_s4 }
  0x33   : > { %p434_p4 = pnand %p432_p1, %p418_p5  ;;  %p440_p0 = scmp.lt.s32.totalorder %s438_s5, %s431_s28 }
  0x35   : > { %p435_p11 = pneg %p434_p4  ;;  %p441_p2 = por %p440_p0, %p439_p6 }
  0x37   : > { %p442_p7 = pnand %p441_p2, %p435_p11 }
  0x39   : > { %445 = shalt.err (!%p442_p7)
}
  0x3a   : > { %s520_s6 = smov 128   ;;  %s521_s8 = smov 8  }
  0x3b   : > { %355 = dma.hbm_to_vmem [thread:$0]  (!%p620_p3), %s634_s16, 768, %s629_s7, %s636_s17, %s520_s6, %s520_s6, %s521_s8  }
  0x3c   : > { %144 = sbr.rel (%p600_p13) target bundleno = 103 (0x67), region = 28  ;;  %p748_p5 = scmp.eq.s32.totalorder (!%p600_p13), %s561_s13, 0 }
  0x43   : > { %491 = dma.done.wait (%p748_p5), [#allocation5], 16   ;;  %p749_p12 = pmov %p748_p5 }
  0x44   : > { %s671_s14 = sand.u32 1, %s508_s10   ;;  %p750_p6 = scmp.ne.s32.totalorder %s742_s20, 0 }
  0x45   : > { %493 = vsyncadd (%p749_p12), [#allocation5], 4294967280  ;;  %s338_s19 = smul.u32 48, %s671_s14  ;;  %s151_s24 = scalar_lea.sflag [#allocation3], %s671_s14 }
  0x47   : > { %s154_s25 = scalar_lea.vmem [#allocation6], %s338_s19 }
  0x48   : > { %495 = dma.done.wait (%p750_p6), %s151_s24, 768  }
  0x49   : > { %497 = vsyncadd (%p750_p6), %s151_s24, 4294966528 }
  0x4a   : > { %159 = sfence }
  0x4b   : > { %s178_s23 = sld [smem:[#allocation2]]  ;;  %s321_s29 = sld [smem:[#allocation2 + $0x1]]  ;;  %v176_v0 = vld [vmem:[%s154_s25] sm:$0xff]  ;;  %v177_v1 = vld [vmem:[%s154_s25 + $0x8] sm:$0xff]  ;;  %v319_v2 = vld [vmem:[%s154_s25 + $0x10] sm:$0xff]  ;;  %vm184_vm0 = vcmask 130048  }
  0x4c   : > { %s328_s7 = sld [smem:[#allocation2 + $0x2]]  ;;  %v320_v3 = vld [vmem:[%s154_s25 + $0x18] sm:$0xff]  ;;  %s175_s16 = scalar_lea.vmem [#allocation7], %s338_s19  ;;  %v326_v5 = vld [vmem:[%s154_s25 + $0x20] sm:$0xff]  ;;  %v327_v6 = vld [vmem:[%s154_s25 + $0x28] sm:$0xff] }
  0x4d   : > { %s225_s17 = sshll.u32 %s175_s16, 4  ;;  %s339_s26 = smul.u32 768, %s561_s13  ;;  %s680_s17 = int_to_ptr.vmem [resolvable:$true] %s225_s17 }
  0x4e   : > { %s212_s30 = scalar_lea.sflag [#allocation4], %s671_s14  ;;  %s446_s28 = scalar_lea.vmem %s680_s17, 768 }
  0x4f   : > { %s687_s27 = scalar_lea.hbm %s737_s2, %s339_s26  ;;  %p447_p13 = scmp.ne.s32.totalorder %s680_s17, %s446_s28 }
  0x50   : > { %p751_p3 = scmp.ne.s32.totalorder %s743_s21, 0  ;;  %s522_s3 = smov [#allocation7]  }
  0x51   : > { %v179_v4 = vstv %s178_s23  ;;  %v191_v9 = vstv %s321_s29  ;;  %s450_s4 = sshll.u32 %s522_s3, 4  ;;  %s451_s4 = int_to_ptr.vmem [resolvable:$false] %s450_s4 }
  0x52   : > { %v180_v7 = vmul.f32 %v179_v4, %v176_v0  ;;  %v181_v8 = vmul.f32 %v179_v4, %v177_v1  ;;  %v192_v10 = vmul.f32 %v319_v2, %v191_v9  ;;  %v193_v11 = vmul.f32 %v320_v3, %v191_v9  ;;  %p448_p8 = pnand %p447_p13, %p751_p3  ;;  %s452_s5 = scalar_lea.vmem %s451_s4, 1536 }
  0x53   : > { %v203_v12 = vstv %s328_s7  ;;  %p453_p10 = scmp.lt.s32.totalorder %s680_s17, %s451_s4  ;;  %p454_p1 = scmp.lt.s32.totalorder %s452_s5, %s446_s28 }
  0x54   : > { %v317_v13 = vadd.f32 -1.0, %v180_v7  ;;  %v318_v14 = vadd.f32 -1.0, %v181_v8  ;;  %v204_v15 = vmul.f32 %v326_v5, %v203_v12  ;;  %v205_v16 = vmul.f32 %v327_v6, %v203_v12  ;;  %p449_p9 = pneg %p448_p8 }
  0x55   : > { %v322_v17 = vadd.f32 -1.0, %v192_v10  ;;  %v323_v18 = vadd.f32 -1.0, %v193_v11  ;;  %p455_p4 = por %p454_p1, %p453_p10 }
  0x56   : > { %185 = vst.msk [vmem:[%s175_s16] sm:$0xff] %vm184_vm0, %v317_v13  ;;  %186 = vst.msk [vmem:[%s175_s16 + $0x8] sm:$0xff] %vm184_vm0, %v318_v14  ;;  %v329_v19 = vadd.f32 -1.0, %v204_v15  ;;  %v330_v20 = vadd.f32 -1.0, %v205_v16 }
  0x57   : > { %324 = vst.msk [vmem:[%s175_s16 + $0x10] sm:$0xff] %vm184_vm0, %v322_v17  ;;  %325 = vst.msk [vmem:[%s175_s16 + $0x18] sm:$0xff] %vm184_vm0, %v323_v18  ;;  %p456_p11 = pnand %p455_p4, %p449_p9 }
  0x58   : > { %331 = vst.msk [vmem:[%s175_s16 + $0x20] sm:$0xff] %vm184_vm0, %v329_v19  ;;  %332 = vst.msk [vmem:[%s175_s16 + $0x28] sm:$0xff] %vm184_vm0, %v330_v20 }
  0x59   : > { %459 = shalt.err (!%p456_p11)
}
  0x5a   : > { %s460_s6 = scalar_lea.hbm %s687_s27, 768  ;;  %s464_s24 = scalar_lea.hbm %s737_s2, 1536 }
  0x5b   : > { %p461_p0 = scmp.ne.s32.totalorder %s687_s27, %s460_s6  ;;  %p465_p5 = scmp.lt.u32.totalorder %s687_s27, %s737_s2 }
  0x5c   : > { %p466_p12 = scmp.lt.u32.totalorder %s464_s24, %s460_s6  ;;  %p468_p13 = scmp.lt.u32.totalorder %s460_s6, %s687_s27 }
  0x5d   : > { %p462_p2 = pnand %p461_p0, %p751_p3 }
  0x5e   : > { %p467_p6 = por %p466_p12, %p465_p5 }
  0x5f   : > { %p463_p7 = pneg %p462_p2 }
  0x60   : > { %p469_p8 = por %p468_p13, %p467_p6 }
  0x62   : > { %p470_p9 = pnand %p469_p8, %p463_p7 }
  0x64   : > { %473 = shalt.err (!%p470_p9)
}
  0x65   : > { %s523_s29 = smov 128   ;;  %s524_s7 = smov 8  }
  0x66   : > { %346 = dma.vmem_to_hbm [thread:$0]  (%p751_p3), %s680_s17, 768, %s687_s27, %s212_s30, %s523_s29, %s523_s29, %s524_s7  }
  0x67 PF: > { %s240_s16 = sand.u32 1, %s504_s9   ;;  %p752_p10 = scmp.ne.s32.totalorder %s744_s22, 0 }
  0x68   : > { %p753_p1 = scmp.ge.s32.totalorder %s516_s12, 2  ;;  %s241_s26 = scalar_lea.sflag [#allocation4], %s240_s16 }
  0x6a   : > { %p357_p4 = pnand %p753_p1, %p752_p10 }
  0x6c   : > { %499 = dma.done.wait (!%p357_p4), %s241_s26, 768  }
  0x6d   : > { %501 = vsyncadd (!%p357_p4), %s241_s26, 4294966528  ;;  %p16_p11 = scmp.ge.s32.totalorder %s565_s15, 4   ;;  %s754_s9 = smov %s508_s10 }
  0x6e   : > { %s755_s10 = smov %s512_s11  ;;  %s756_s11 = smov %s577_s18 }
  0x6f   : > { %s757_s12 = smov %s565_s15  ;;  %18 = sbr.rel (!%p16_p11) target bundleno = 6 (0x6), region = 82 }
  0x76   :  { %246 = vsyncpa [#allocation3], 1 }
  0x77   :  { %248 = vsyncpa [#allocation3 + $0x1], 1 }
  0x78   :  { %249 = vsyncpa [#allocation4], 1 }
  0x79   :  { %251 = vsyncpa [#allocation4 + $0x1], 1 }
  0x7a   :  { %252 = vsyncpa [#allocation5], 1 }
  0x7b   :  { %254 = vsyncpa [#allocation5 + $0x1], 1 }

// kernel: three_sobel_filter.2
= control target key start
LH: loop header
LB: loop body
LE: loop exit
PB: predicated region body
PF: predicated region fallthrough
CT: control target
= control target key end

     0   :  { %8 = vsyncpa [#allocation3], 0  ;;  %s1726_s0 = inlined_call_operand.vmem [shape: f32[2,22,22], index: 0, kind: input, shape index: {}]   ;;  %s1727_s1 = inlined_call_operand.hbm [shape: f32[2,3,16,16], index: 1, kind: output, shape index: {0}]   ;;  %s1728_s2 = inlined_call_operand.vmem [shape: f32[2,3,128], index: 2, kind: output, shape index: {1}]  }
   0x1   :  { %10 = vsyncpa [#allocation3 + $0x1], 0  ;;  %s1124_s9 = smov 0   ;;  %s1126_s10 = smov 0  }
   0x2   :  { %s1128_s11 = smov 0   ;;  %s1130_s12 = smov 0  }
   0x3 LB: > { %s1145_s13 = sadd.s32 4294967295, %s1098_s12   ;;  %s966_s14 = sadd.s32 4294967294, %s1098_s12   ;;  %s1098_s12 = sphi %s1130_s12, %s1803_s12   ;;  %s1094_s11 = sphi %s1128_s11, %s1802_s11   ;;  %s1090_s10 = sphi %s1126_s10, %s1801_s10   ;;  %s1086_s9 = sphi %s1124_s9, %s1800_s9  }
   0x4   : > { %s1149_s15 = sadd.s32 1, %s1098_s12   ;;  %s49_s16 = sadd.s32 1, %s1094_s11 }
   0x5   : > { %s46_s17 = ssub.s32 %s1098_s12, %s1149_s15  ;;  %p59_p0 = scmp.ne.s32.totalorder %s1094_s11, %s1090_s10 }
   0x6   : > { %p47_p1 = scmp.eq.s32.totalorder %s46_s17, 0  ;;  %p60_p2 = scmp.eq.s32.totalorder %s1145_s13, 1 }
   0x7   : > { %p65_p3 = scmp.ne.s32.totalorder %s1090_s10, %s1086_s9  ;;  %p66_p4 = scmp.eq.s32.totalorder %s966_s14, 1 }
   0x8   : > { %s1160_s18 = scalar_select %p47_p1, %s1094_s11, %s49_s16  }
   0x9   : > { %p1162_p5 = por %p60_p2, %p59_p0  ;;  %p1166_p6 = por %p66_p4, %p65_p3 }
   0xa   : > { %p969_p7 = scmp.ge.s32.totalorder %s1098_s12, 1  ;;  %p118_p8 = scmp.lt.s32.totalorder %s1098_s12, 3 }
   0xc   : > { %p119_p9 = pnand %p969_p7, %p118_p8 }
   0xe   : > { %122 = sbr.rel (%p119_p9) target bundleno = 507 (0x1fb), region = 24 }
  0x15   : > { %p144_p10 = scmp.lt.s32.totalorder %s1145_s13, 1  ;;  %s1100_s26 = smov 127   ;;  %vm204_vm0 = vcmask 1046528   ;;  %vm219_vm1 = vcmask 1045504   ;;  %vm447_vm2 = vcmask 1044480   ;;  %vm473_vm3 = vcmask 1043456  }
  0x16   : > { %s1101_s27 = smov 126   ;;  %s1102_s28 = smov 125   ;;  %vm529_vm4 = vcmask 138249   ;;  %vm533_vm5 = vcmask 131080   ;;  %vm531_vm6 = vcmask 138248   ;;  %vm790_vm7 = vcmask 1042432  }
  0x17   : > { %s1174_s21 = scalar_select %p144_p10, %s1145_s13, 1  ;;  %vm812_vm8 = vcmask 1041408   ;;  %vm277_vm9 = vcmask 146448   ;;  %vm275_vm10 = vcmask 146450   ;;  %vm271_vm11 = vcmask 130048  }
  0x18   : > { %s1103_s29 = smov 124   ;;  %s1104_s30 = smov 123   ;;  %vm279_vm12 = vcmask 140304   ;;  %vm269_vm13 = vcmask 130050   ;;  %vm273_vm14 = vcmask 123904   ;;  %vm524_vm15 = vcmask 130049  }
  0x19   : > { %s981_s22 = smul.u32 24, %s1174_s21  ;;  %s1105_s3 = smov 122  }
  0x1a   : > { %s135_s4 = sand.u32 1, %s1090_s10   ;;  %s988_s7 = smul.u32 768, %s1145_s13 }
  0x1b   : > { %s148_s25 = scalar_lea.vmem %s1726_s0, %s981_s22  ;;  %s980_s5 = smul.u32 48, %s135_s4 }
  0x1c   : > { %v1180_v0 = vld [vmem:[%s148_s25 + $0x10] sm:$0x3f]  ;;  %v1182_v1 = vld [vmem:[%s148_s25] sm:$0xff]  ;;  %v1184_v2 = vld [vmem:[%s148_s25 + $0x8] sm:$0xff]  ;;  %s1676_s17 = scalar_lea.hbm %s1727_s1, %s988_s7  ;;  %s1681_s13 = scalar_lea.sflag [#allocation3], %s135_s4 }
  0x1d   : > { %v314_v3 = vmul.f32 -2.0, %v1180_v0  ;;  %v312_v4 = vmul.f32 -2.0, %v1182_v1  ;;  %v330_v5 = vmul.f32 6.0, %v1182_v1  ;;  %v313_v6 = vmul.f32 -2.0, %v1184_v2  ;;  %s1647_s6 = scalar_lea.vmem [#allocation2], %s980_s5  ;;  %s1106_s23 = smov [#allocation2]  }
  0x1e   : > { %v332_v7 = vmul.f32 6.0, %v1180_v0  ;;  %v331_v8 = vmul.f32 6.0, %v1184_v2  ;;  %v561_v9 = vmul.f32 15.0, %v1184_v2  ;;  %v560_v10 = vmul.f32 15.0, %v1182_v1  ;;  %s877_s8 = sshll.u32 %s1647_s6, 4  ;;  %s1040_s24 = sshll.u32 %s1106_s23, 4  ;;  %s1671_s8 = int_to_ptr.vmem [resolvable:$true] %s877_s8  ;;  %s1041_s24 = int_to_ptr.vmem [resolvable:$false] %s1040_s24 }
  0x1f   : > { %322 = vrot.lane.b32.xlu1 %v314_v3, %s1100_s26  ;;  %318 = vrot.lane.b32.xlu0 %v312_v4, %s1100_s26  ;;  %v578_v11 = vmul.f32 -3.0, %v1182_v1  ;;  %v562_v12 = vmul.f32 15.0, %v1180_v0  ;;  %v580_v13 = vmul.f32 -3.0, %v1180_v0  ;;  %v579_v14 = vmul.f32 -3.0, %v1184_v2  ;;  %s1036_s22 = scalar_lea.vmem %s1671_s8, 768  ;;  %s1042_s25 = scalar_lea.vmem %s1041_s24, 1536 }
  0x20   : > { %v597_v15 = vmul.f32 20.0, %v1184_v2  ;;  %v596_v16 = vmul.f32 20.0, %v1182_v1  ;;  %v626_v17 = vmul.f32 3.0, %v1182_v1  ;;  %v598_v18 = vmul.f32 20.0, %v1180_v0  ;;  %p1037_p11 = scmp.ne.s32.totalorder %s1671_s8, %s1036_s22  ;;  %p1043_p0 = scmp.lt.s32.totalorder %s1671_s8, %s1041_s24 }
  0x21   : > { %v628_v19 = vmul.f32 3.0, %v1180_v0  ;;  %v627_v20 = vmul.f32 3.0, %v1184_v2  ;;  %v295_v21 = vmul.f32 4.0, %v1184_v2  ;;  %v294_v22 = vmul.f32 4.0, %v1182_v1  ;;  %p1044_p1 = scmp.lt.s32.totalorder %s1042_s25, %s1036_s22 }
  0x22   : > { %v296_v23 = vmul.f32 4.0, %v1180_v0  ;;  %v160_v24 = vmul.f32 2.0, %v1184_v2  ;;  %v159_v25 = vmul.f32 2.0, %v1182_v1  ;;  %v161_v26 = vmul.f32 2.0, %v1180_v0  ;;  %p1038_p12 = pnand %p1037_p11, %p1162_p5 }
  0x23   : > { %548 = vrot.lane.b32.xlu1 %v330_v5, %s1100_s26  ;;  %320 = vrot.lane.b32.xlu0 %v313_v6, %s1100_s26  ;;  %v1262_v33 = vmul.f32 -1.0, %v1182_v1  ;;  %v1267_v40 = vmul.f32 -1.0, %v1180_v0  ;;  %v1273_v42 = vmul.f32 -1.0, %v1184_v2  ;;  %p1045_p2 = por %p1044_p1, %p1043_p0 }
  0x24   : > { %p1039_p13 = pneg %p1038_p12 }
  0x26   : > { %p1046_p3 = pnand %p1045_p2, %p1039_p13 }
  0x27   : > { %552 = vrot.lane.b32.xlu1 %v332_v7, %s1100_s26  ;;  %550 = vrot.lane.b32.xlu0 %v331_v8, %s1100_s26 }
  0x2b   : > { %568 = vrot.lane.b32.xlu1 %v561_v9, %s1101_s27  ;;  %566 = vrot.lane.b32.xlu0 %v560_v10, %s1101_s27 }
  0x2f   : > { %584 = vrot.lane.b32.xlu1 %v578_v11, %s1101_s27  ;;  %570 = vrot.lane.b32.xlu0 %v562_v12, %s1101_s27 }
  0x33   : > { %588 = vrot.lane.b32.xlu1 %v580_v13, %s1101_s27  ;;  %586 = vrot.lane.b32.xlu0 %v579_v14, %s1101_s27 }
  0x37   : > { %604 = vrot.lane.b32.xlu1 %v597_v15, %s1102_s28  ;;  %602 = vrot.lane.b32.xlu0 %v596_v16, %s1102_s28 }
  0x3b   : > { %632 = vrot.lane.b32.xlu1 %v626_v17, %s1103_s29  ;;  %606 = vrot.lane.b32.xlu0 %v598_v18, %s1102_s28 }
  0x3f   : > { %636 = vrot.lane.b32.xlu1 %v628_v19, %s1103_s29  ;;  %634 = vrot.lane.b32.xlu0 %v627_v20, %s1103_s29 }
  0x43   : > { %302 = vrot.lane.b32.xlu1 %v295_v21, %s1100_s26  ;;  %300 = vrot.lane.b32.xlu0 %v294_v22, %s1100_s26 }
  0x47   : > { %614 = vrot.lane.b32.xlu1 %v560_v10, %s1103_s29  ;;  %304 = vrot.lane.b32.xlu0 %v296_v23, %s1100_s26 }
  0x4b   : > { %618 = vrot.lane.b32.xlu1 %v562_v12, %s1103_s29  ;;  %616 = vrot.lane.b32.xlu0 %v561_v9, %s1103_s29 }
  0x4f   : > { %658 = vrot.lane.b32.xlu1 %v160_v24, %s1104_s30  ;;  %656 = vrot.lane.b32.xlu0 %v159_v25, %s1104_s30 }
  0x53   : > { %336 = vrot.lane.b32.xlu1 %v330_v5, %s1101_s27  ;;  %660 = vrot.lane.b32.xlu0 %v161_v26, %s1104_s30 }
  0x57   : > { %340 = vrot.lane.b32.xlu1 %v332_v7, %s1101_s27  ;;  %338 = vrot.lane.b32.xlu0 %v331_v8, %s1101_s27 }
  0x5b   : > { %362 = vrot.lane.b32.xlu1 %v160_v24, %s1102_s28  ;;  %360 = vrot.lane.b32.xlu0 %v159_v25, %s1102_s28 }
  0x5f   : > { %644 = vrot.lane.b32.xlu1 %v330_v5, %s1104_s30  ;;  %364 = vrot.lane.b32.xlu0 %v161_v26, %s1102_s28 }
  0x63   : > { %648 = vrot.lane.b32.xlu1 %v332_v7, %s1104_s30  ;;  %646 = vrot.lane.b32.xlu0 %v331_v8, %s1104_s30 }
  0x67   : > { %670 = vrot.lane.b32.xlu1 %v1184_v2, %s1105_s3  ;;  %668 = vrot.lane.b32.xlu0 %v1182_v1, %s1105_s3 }
  0x6b   : > { %348 = vrot.lane.b32.xlu1 %v294_v22, %s1102_s28  ;;  %672 = vrot.lane.b32.xlu0 %v1180_v0, %s1105_s3 }
  0x6f   : > { %352 = vrot.lane.b32.xlu1 %v296_v23, %s1102_s28  ;;  %350 = vrot.lane.b32.xlu0 %v295_v21, %s1102_s28 }
  0x73   : > { %374 = vrot.lane.b32.xlu1 %v1184_v2, %s1103_s29  ;;  %372 = vrot.lane.b32.xlu0 %v1182_v1, %s1103_s29 }
  0x77   : > { %180 = vrot.lane.b32.xlu1 %v1182_v1, %s1101_s27  ;;  %376 = vrot.lane.b32.xlu0 %v1180_v0, %s1103_s29 }
  0x7b   : > { %184 = vrot.lane.b32.xlu1 %v1180_v0, %s1101_s27  ;;  %182 = vrot.lane.b32.xlu0 %v1184_v2, %s1101_s27 }
  0x7f   : > { %167 = vrot.lane.b32.xlu1 %v160_v24, %s1100_s26  ;;  %165 = vrot.lane.b32.xlu0 %v159_v25, %s1100_s26 }
  0x83   : > { %169 = vrot.lane.b32.xlu0 %v161_v26, %s1100_s26 }
  0x91   : > { %v323_v27 = vpop.permute.xlu1 %322  ;;  %v319_v28 = vpop.permute.xlu0 %318 }
  0x92   : > { %v1270_v41 = vadd.f32 %v319_v28, %v1262_v33  ;;  %v329_v48 = vadd.f32 %v323_v27, %v1267_v40 }
  0x95   : > { %v549_v29 = vpop.permute.xlu1 %548  ;;  %v321_v30 = vpop.permute.xlu0 %320 }
  0x96   : > { %v557_v34 = vadd.f32 %v549_v29, %v1182_v1  ;;  %v328_v49 = vadd.f32 %v321_v30, %v1273_v42 }
  0x99   : > { %v553_v31 = vpop.permute.xlu1 %552  ;;  %v551_v32 = vpop.permute.xlu0 %550 }
  0x9a   : > { %v558_v35 = vadd.f32 %v551_v32, %v1184_v2  ;;  %v559_v43 = vadd.f32 %v553_v31, %v1180_v0 }
  0x9d   : > { %v569_v36 = vpop.permute.xlu1 %568  ;;  %v567_v37 = vpop.permute.xlu0 %566 }
  0x9e   : > { %v576_v38 = vadd.f32 %v569_v36, %v558_v35  ;;  %v575_v39 = vadd.f32 %v567_v37, %v557_v34 }
  0xa1   : > { %v585_v44 = vpop.permute.xlu1 %584  ;;  %v571_v45 = vpop.permute.xlu0 %570 }
  0xa2   : > { %v593_v46 = vadd.f32 %v585_v44, %v1270_v41  ;;  %v577_v47 = vadd.f32 %v571_v45, %v559_v43 }
  0xa5   : > { %v589_v50 = vpop.permute.xlu1 %588  ;;  %v587_v51 = vpop.permute.xlu0 %586 }
  0xa6   : > { %v595_v52 = vadd.f32 %v589_v50, %v329_v48  ;;  %v594_v53 = vadd.f32 %v587_v51, %v328_v49 }
  0xa9   : > { %v605_v54 = vpop.permute.xlu1 %604  ;;  %v603_v55 = vpop.permute.xlu0 %602 }
  0xaa   : > { %v612_v56 = vadd.f32 %v605_v54, %v576_v38  ;;  %v611_v57 = vadd.f32 %v603_v55, %v575_v39 }
  0xad   : > { %v633_v58 = vpop.permute.xlu1 %632  ;;  %v607_v59 = vpop.permute.xlu0 %606 }
  0xae   : > { %v641_v60 = vadd.f32 %v633_v58, %v593_v46  ;;  %v613_v61 = vadd.f32 %v607_v59, %v577_v47 }
  0xb1   : > { %v637_v62 = vpop.permute.xlu1 %636  ;;  %v635_v63 = vpop.permute.xlu0 %634 }
  0xb2   : > { %v642_v3 = vadd.f32 %v635_v63, %v594_v53  ;;  %v643_v22 = vadd.f32 %v637_v62, %v595_v52 }
  0xb5   : > { %v303_v4 = vpop.permute.xlu1 %302  ;;  %v301_v5 = vpop.permute.xlu0 %300 }
  0xb6   : > { %v310_v25 = vadd.f32 %v303_v4, %v1184_v2  ;;  %v309_v26 = vadd.f32 %v301_v5, %v1182_v1 }
  0xb9   : > { %v615_v6 = vpop.permute.xlu1 %614  ;;  %v305_v7 = vpop.permute.xlu0 %304 }
  0xba   : > { %v623_v23 = vadd.f32 %v615_v6, %v611_v57  ;;  %v311_v27 = vadd.f32 %v305_v7, %v1180_v0 }
  0xbd   : > { %v619_v8 = vpop.permute.xlu1 %618  ;;  %v617_v9 = vpop.permute.xlu0 %616 }
  0xbe   : > { %v624_v24 = vadd.f32 %v617_v9, %v612_v56  ;;  %v625_v28 = vadd.f32 %v619_v8, %v613_v61 }
  0xc1   : > { %v659_v10 = vpop.permute.xlu1 %658  ;;  %v657_v11 = vpop.permute.xlu0 %656 }
  0xc2   : > { %v666_v29 = vadd.f32 %v659_v10, %v642_v3  ;;  %v665_v30 = vadd.f32 %v657_v11, %v641_v60 }
  0xc5   : > { %v337_v12 = vpop.permute.xlu1 %336  ;;  %v661_v13 = vpop.permute.xlu0 %660 }
  0xc6   : > { %v345_v34 = vadd.f32 %v337_v12, %v309_v26  ;;  %v667_v35 = vadd.f32 %v661_v13, %v643_v22 }
  0xc9   : > { %v341_v14 = vpop.permute.xlu1 %340  ;;  %v339_v15 = vpop.permute.xlu0 %338 }
  0xca   : > { %v347_v36 = vadd.f32 %v341_v14, %v311_v27  ;;  %v346_v37 = vadd.f32 %v339_v15, %v310_v25 }
  0xcd   : > { %v363_v16 = vpop.permute.xlu1 %362  ;;  %v361_v17 = vpop.permute.xlu0 %360 }
  0xce   : > { %v370_v47 = vadd.f32 %v363_v16, %v328_v49  ;;  %v369_v50 = vadd.f32 %v361_v17, %v1270_v41 }
  0xd1   : > { %v645_v18 = vpop.permute.xlu1 %644  ;;  %v365_v19 = vpop.permute.xlu0 %364 }
  0xd2   : > { %v653_v31 = vadd.f32 %v645_v18, %v623_v23  ;;  %v1291_v51 = vadd.f32 %v365_v19, %v329_v48 }
  0xd5   : > { %v649_v20 = vpop.permute.xlu1 %648  ;;  %v647_v21 = vpop.permute.xlu0 %646 }
  0xd6   : > { %v654_v32 = vadd.f32 %v647_v21, %v624_v24  ;;  %v655_v52 = vadd.f32 %v649_v20, %v625_v28 }
  0xd9   : > { %v671_v38 = vpop.permute.xlu1 %670  ;;  %v669_v39 = vpop.permute.xlu0 %668 }
  0xda   : > { %v1282_v43 = vadd.f32 %v671_v38, %v654_v32  ;;  %v1284_v44 = vadd.f32 %v671_v38, %v666_v29  ;;  %v1286_v45 = vadd.f32 %v669_v39, %v653_v31  ;;  %v1288_v46 = vadd.f32 %v669_v39, %v665_v30 }
  0xdc   : > { %1747 = vst [vmem:[#allocation5_spill] sm:$0xff] %v1284_v44  ;;  %1748 = vst [vmem:[#allocation6_spill] sm:$0xff] %v1288_v46  ;;  %v1294_v53 = vmul.f32 -2.0, %v1282_v43  ;;  %v1297_v54 = vmul.f32 6.0, %v1284_v44  ;;  %v1300_v55 = vmul.f32 15.0, %v1284_v44  ;;  %v1303_v56 = vmul.f32 20.0, %v1284_v44 }
  0xdd   : > { %v685_v57 = vmul.f32 -2.0, %v1286_v45  ;;  %v1307_v49 = vmul.f32 6.0, %v1288_v46  ;;  %v1310_v41 = vmul.f32 15.0, %v1288_v46  ;;  %v1313_v48 = vmul.f32 20.0, %v1288_v46  ;;  %v349_v58 = vpop.permute.xlu1 %348  ;;  %v673_v59 = vpop.permute.xlu0 %672 }
  0xde   : > { %1749 = vst [vmem:[#allocation7_spill] sm:$0xff] %v1297_v54  ;;  %v1730_v60 = vrot.slane %v1294_v53, 1  ;;  %v707_v61 = vrot.slane %v1297_v54, 1  ;;  %v1729_v62 = vrot.slane %v1300_v55, 2  ;;  %v357_v9 = vadd.f32 %v349_v58, %v345_v34 }
  0xdf   : > { %1750 = vst [vmem:[#allocation8_spill] sm:$0xff] %v1307_v49  ;;  %v691_v4 = vrot.slane %v685_v57, 1  ;;  %v706_v5 = vrot.slane %v1307_v49, 1  ;;  %v1324_v10 = vadd.f32 %v673_v59, %v655_v52  ;;  %v1327_v12 = vadd.f32 %v673_v59, %v667_v35 }
  0xe0   : > { %v1330_v15 = vmul.f32 -1.0, %v1286_v45  ;;  %v1333_v16 = vmul.f32 -1.0, %v1282_v43 }
  0xe1   : > { %1751 = vst [vmem:[#allocation9_spill] sm:$0xff] %v1324_v10  ;;  %v708_v11 = vsel %vm204_vm0, %v706_v5, %v707_v61  ;;  %1752 = vst [vmem:[#allocation10_spill] sm:$0xff] %v1327_v12  ;;  %v353_v13 = vpop.permute.xlu1 %352  ;;  %v351_v14 = vpop.permute.xlu0 %350  ;;  %v1339_v18 = vmul.f32 -2.0, %v1324_v10  ;;  %v1342_v19 = vmul.f32 -3.0, %v1324_v10  ;;  %v1345_v20 = vmul.f32 3.0, %v1324_v10 }
  0xe2   : > { %v1336_v17 = vadd.f32 %v708_v11, %v1288_v46  ;;  %v1348_v21 = vmul.f32 6.0, %v1327_v12  ;;  %v1351_v22 = vmul.f32 15.0, %v1327_v12  ;;  %v1354_v23 = vmul.f32 20.0, %v1327_v12 }
  0xe3   : > { %1753 = vst [vmem:[#allocation11_spill] sm:$0xff] %v1345_v20  ;;  %v1357_v24 = vmul.f32 2.0, %v1324_v10  ;;  %v359_v52 = vadd.f32 %v353_v13, %v347_v36  ;;  %v358_v57 = vadd.f32 %v351_v14, %v346_v37  ;;  %v1389_v36 = vsel %vm204_vm0, %v691_v4, %v1730_v60 }
  0xe4   : > { %1754 = vst [vmem:[#allocation12_spill] sm:$0xff] %v1348_v21  ;;  %v709_v29 = vrot.slane %v1348_v21, 1  ;;  %v739_v30 = vrot.slane %v1351_v22, 2 }
  0xe5   : > { %1755 = vst [vmem:[#allocation13_spill] sm:$0xff] %v1357_v24  ;;  %v375_v34 = vpop.permute.xlu1 %374  ;;  %v373_v35 = vpop.permute.xlu0 %372 }
  0xe6   : > { %v710_v58 = vsel %vm204_vm0, %v707_v61, %v709_v29  ;;  %v1373_v59 = vsel %vm219_vm1, %v1729_v62, %v739_v30  ;;  %v1375_v5 = vadd.f32 %v375_v34, %v370_v47  ;;  %v1377_v11 = vadd.f32 %v373_v35, %v357_v9 }
  0xe7   : > { %v1380_v28 = vadd.f32 %v710_v58, %v1284_v44  ;;  %v1382_v27 = vadd.f32 %v375_v34, %v358_v57  ;;  %v1384_v38 = vadd.f32 %v373_v35, %v369_v50 }
  0xe8   : > { %v1392_v37 = vmul.f32 4.0, %v1375_v5  ;;  %v1395_v47 = vmul.f32 6.0, %v1375_v5  ;;  %v387_v9 = vmul.f32 -1.0, %v1377_v11  ;;  %v390_v58 = vmul.f32 -2.0, %v1377_v11 }
  0xe9   : > { %v1399_v13 = vpop.permute.xlu1 %180  ;;  %v377_v14 = vpop.permute.xlu0 %376  ;;  %v1402_v50 = vmul.f32 -1.0, %v1382_v27  ;;  %v1405_v29 = vmul.f32 -2.0, %v1382_v27  ;;  %v1408_v4 = vmul.f32 2.0, %v1382_v27  ;;  %v1418_v8 = vmul.f32 4.0, %v1384_v38 }
  0xea   : > { %v414_v34 = vrot.slane %v1392_v37, 1  ;;  %v1731_v35 = vrot.slane %v1395_v47, 2  ;;  %v424_v3 = vmul.f32 6.0, %v1384_v38  ;;  %v396_v26 = vrot.slane %v390_v58, 1 }
  0xeb   : > { %v397_v39 = vrot.slane %v1405_v29, 1  ;;  %v1422_v31 = vmul.f32 2.0, %v1377_v11  ;;  %v413_v60 = vrot.slane %v1418_v8, 1  ;;  %v1430_v61 = vadd.f32 %v1399_v13, %v1262_v33 }
  0xec   : > { %v430_v29 = vrot.slane %v424_v3, 2  ;;  %v1434_v57 = vadd.f32 %v377_v14, %v359_v52  ;;  %v1437_v7 = vadd.f32 %v377_v14, %v1291_v51 }
  0xed   : > { %v185_v6 = vpop.permute.xlu1 %184  ;;  %v183_v62 = vpop.permute.xlu0 %182  ;;  %1756 = vst [vmem:[#allocation14_spill] sm:$0xff] %v1430_v61  ;;  %v398_v58 = vsel %vm204_vm0, %v396_v26, %v397_v39  ;;  %v415_v32 = vsel %vm204_vm0, %v413_v60, %v414_v34  ;;  %v198_v33 = vmul.f32 2.0, %v1430_v61 }
  0xee   : > { %v1439_v63 = vadd.f32 %v398_v58, %v387_v9  ;;  %v432_v3 = vsel %vm219_vm1, %v430_v29, %v1731_v35  ;;  %v421_v25 = vadd.f32 %v415_v32, %v1384_v38  ;;  %v389_v52 = vmul.f32 -1.0, %v1434_v57 }
  0xef   : > { %v392_v30 = vmul.f32 -2.0, %v1434_v57  ;;  %v205_v9 = vrot.slane %v198_v33, 1  ;;  %v1451_v58 = vmul.f32 4.0, %v1437_v7  ;;  %v426_v60 = vmul.f32 6.0, %v1437_v7 }
  0xf0   : > { %v443_v29 = vmul.f32 2.0, %v1434_v57  ;;  %v438_v35 = vadd.f32 %v432_v3, %v421_v25  ;;  %v1456_v32 = vadd.f32 %v185_v6, %v1267_v40  ;;  %v1459_v26 = vadd.f32 %v183_v62, %v1273_v42 }
  0xf1   : > { %v168_v51 = vpop.permute.xlu1 %167  ;;  %v166_v14 = vpop.permute.xlu0 %165  ;;  %v399_v12 = vrot.slane %v392_v30, 1  ;;  %v416_v61 = vrot.slane %v1451_v58, 1  ;;  %v433_v44 = vrot.slane %v426_v60, 2 }
  0xf2   : > { %v451_v46 = vrot.slane %v443_v29, 3  ;;  %v175_v33 = vadd.f32 %v168_v51, %v1184_v2  ;;  %v200_v24 = vmul.f32 2.0, %v1456_v32  ;;  %v1743_v10 = vrot.slane %v1456_v32, 2 }
  0xf3   : > { %v199_v21 = vmul.f32 2.0, %v1459_v26  ;;  %v1744_v25 = vrot.slane %v1459_v26, 2  ;;  %v417_v40 = vsel %vm204_vm0, %v414_v34, %v416_v61  ;;  %v423_v42 = vadd.f32 %v416_v61, %v1437_v7 }
  0xf4   : > { %v190_v3 = vadd.f32 %v183_v62, %v175_v33  ;;  %v174_v60 = vadd.f32 %v166_v14, %v1182_v1  ;;  %v208_v29 = vrot.slane %v200_v24, 1  ;;  %v400_v62 = vsel %vm204_vm0, %v397_v39, %v399_v12 }
  0xf5   : > { %v170_v30 = vpop.permute.xlu0 %169  ;;  %v206_v20 = vrot.slane %v199_v21, 1  ;;  %v238_v2 = vsel %vm219_vm1, %v1744_v25, %v1743_v10  ;;  %v422_v39 = vadd.f32 %v417_v40, %v1375_v5  ;;  %v1759_v40 = vrot.slane %v1422_v31, 3 }
  0xf6   : > { %v176_v51 = vadd.f32 %v170_v30, %v1180_v0  ;;  %v1476_v54 = vmul.f32 -1.0, %v190_v3  ;;  %v221_v49 = vrot.slane %v190_v3, 2  ;;  %v189_v34 = vadd.f32 %v1399_v13, %v174_v60 }
  0xf7   : > { %v1481_v1 = vadd.f32 %v208_v29, %v1456_v32  ;;  %v1484_v21 = vsel %vm204_vm0, %v205_v9, %v206_v20  ;;  %v209_v24 = vsel %vm204_vm0, %v206_v20, %v208_v29  ;;  %v405_v30 = vadd.f32 %v400_v62, %v1402_v50 }
  0xf8   : > { %v191_v61 = vadd.f32 %v185_v6, %v176_v51  ;;  %v214_v14 = vadd.f32 %v209_v24, %v1459_v26  ;;  %v195_v0 = vmul.f32 -1.0, %v189_v34  ;;  %v220_v33 = vrot.slane %v189_v34, 2 }
  0xf9   : > { %v406_v13 = vadd.f32 %v399_v12, %v389_v52  ;;  %v1757_v9 = vrot.slane %v1395_v47, 2  ;;  %v440_v6 = vadd.f32 %v433_v44, %v423_v42  ;;  %v1758_v52 = vrot.slane %v1408_v4, 3 }
  0xfa   : > { %v197_v3 = vmul.f32 -1.0, %v191_v61  ;;  %v223_v10 = vrot.slane %v191_v61, 2  ;;  %v1490_v60 = vadd.f32 %v238_v2, %v214_v14  ;;  %v222_v25 = vsel %vm219_vm1, %v220_v33, %v221_v49 }
  0xfb   : > { %v434_v20 = vsel %vm219_vm1, %v1757_v9, %v433_v44  ;;  %v1496_v29 = vadd.f32 %v222_v25, %v195_v0  ;;  %v450_v2 = vsel %vm447_vm2, %v1759_v40, %v1758_v52  ;;  %v1760_v47 = vmov %v1758_v52 }
  0xfc   : > { %v1499_v51 = vsel %vm219_vm1, %v221_v49, %v223_v10  ;;  %v1501_v50 = vadd.f32 %v223_v10, %v197_v3  ;;  %v439_v34 = vadd.f32 %v434_v20, %v422_v39  ;;  %v249_v12 = vand.u32 2147483647, %v1490_v60 }
  0xfd   : > { %v452_v44 = vsel %vm447_vm2, %v1760_v47, %v451_v46  ;;  %v458_v25 = vadd.f32 %v451_v46, %v406_v13  ;;  %v245_v42 = vand.u32 2147483647, %v1496_v29  ;;  %v456_v49 = vadd.f32 %v450_v2, %v1439_v63 }
  0xfe   : > { %v457_v10 = vadd.f32 %v452_v44, %v405_v30  ;;  %v1761_v62 = vrot.slane %v1392_v37, 3  ;;  %v1762_v24 = vrot.slane %v1418_v8, 3  ;;  %v462_v31 = vrot.slane %v1451_v58, 3 }
  0xff   : > { %v1763_v0 = vrot.slane %v1382_v27, 4  ;;  %v1764_v4 = vrot.slane %v1377_v11, 4  ;;  %v477_v33 = vrot.slane %v1434_v57, 4  ;;  %v1765_v30 = vrot.slane %v1375_v5, 4 }
 0x100   : > { %v461_v61 = vsel %vm447_vm2, %v1762_v24, %v1761_v62  ;;  %v1766_v3 = vrot.slane %v1384_v38, 4  ;;  %v491_v13 = vrot.slane %v1437_v7, 4  ;;  %v1768_v58 = vrot.slane %v1294_v53, 1 }
 0x101   : > { %v467_v14 = vadd.f32 %v461_v61, %v438_v35  ;;  %v476_v46 = vsel %vm473_vm3, %v1764_v4, %v1763_v0  ;;  %v1767_v35 = vrot.slane %v1339_v18, 1  ;;  %v1769_v39 = vmov %v1761_v62 }
 0x102   : > { %v482_v63 = vadd.f32 %v476_v46, %v456_v49  ;;  %v490_v8 = vsel %vm473_vm3, %v1766_v3, %v1765_v30  ;;  %v463_v57 = vsel %vm447_vm2, %v1769_v39, %v462_v31  ;;  %v469_v9 = vadd.f32 %v462_v31, %v440_v6 }
 0x103   : > { %v695_v11 = vsel %vm204_vm0, %v1768_v58, %v1767_v35  ;;  %v1770_v20 = vmov %v1763_v0  ;;  %v484_v52 = vadd.f32 %v477_v33, %v458_v25  ;;  %v468_v40 = vadd.f32 %v463_v57, %v439_v34 }
 0x104   : > { %v478_v38 = vsel %vm473_vm3, %v1770_v20, %v477_v33  ;;  %v1771_v2 = vmov %v1765_v30  ;;  %v496_v53 = vadd.f32 %v490_v8, %v467_v14  ;;  %v498_v47 = vadd.f32 %v491_v13, %v469_v9 }
 0x105   : > { %v483_v7 = vadd.f32 %v478_v38, %v457_v10  ;;  %v492_v18 = vsel %vm473_vm3, %v1771_v2, %v491_v13  ;;  %v499_v44 = vand.u32 2147483647, %v482_v63  ;;  %v501_v49 = vand.u32 2147483647, %v484_v52 }
 0x106   : > { %v698_v37 = vadd.f32 %v1389_v36, %v1330_v15  ;;  %v497_v6 = vadd.f32 %v492_v18, %v468_v40  ;;  %v502_v27 = vand.u32 2147483647, %v496_v53  ;;  %v699_v24 = vadd.f32 %v695_v11, %v1333_v16 }
 0x107   : > { %v500_v62 = vand.u32 2147483647, %v483_v7  ;;  %v504_v25 = vand.u32 2147483647, %v498_v47  ;;  %v715_v34 = vmul.f32 -3.0, %v1286_v45  ;;  %v716_v10 = vmul.f32 -3.0, %v1282_v43 }
 0x108   : > { %v1772_v5 = vrot.slane %v1300_v55, 2  ;;  %v1773_v61 = vrot.slane %v1310_v41, 2  ;;  %v503_v14 = vand.u32 2147483647, %v497_v6  ;;  %v505_v0 = vadd.f32 %v502_v27, %v499_v44 }
 0x109   : > { %v744_v36 = vadd.f32 %v1373_v59, %v1380_v28  ;;  %v507_v16 = vadd.f32 %v504_v25, %v501_v49  ;;  %v721_v4 = vrot.slane %v715_v34, 2  ;;  %v722_v46 = vrot.slane %v716_v10, 2  ;;  %v1783_v25 = vld [vmem:[#allocation8_spill] sm:$0xff]  ;;  %v1784_v10 = vld [vmem:[#allocation7_spill] sm:$0xff] }
 0x10a   : > { %v738_v31 = vsel %vm219_vm1, %v1773_v61, %v1772_v5  ;;  %v1774_v33 = vrot.slane %v1303_v56, 3  ;;  %v1775_v63 = vrot.slane %v1313_v48, 3  ;;  %v506_v3 = vadd.f32 %v503_v14, %v500_v62 }
 0x10b   : > { %v743_v15 = vadd.f32 %v738_v31, %v1336_v17  ;;  %v1564_v8 = vmul.f32 0.5, %v505_v0  ;;  %v1776_v13 = vrot.slane %v1354_v23, 3  ;;  %v1571_v28 = vmul.f32 0.5, %v507_v16 }
 0x10c   : > { %v753_v30 = vsel %vm447_vm2, %v1775_v63, %v1774_v33  ;;  %v1777_v35 = vmov %v1774_v33  ;;  %v723_v59 = vsel %vm219_vm1, %v721_v4, %v722_v46  ;;  %v1778_v11 = vrot.slane %v1342_v19, 2 }
 0x10d   : > { %v755_v17 = vsel %vm447_vm2, %v1777_v35, %v1776_v13  ;;  %v758_v58 = vadd.f32 %v753_v30, %v743_v15  ;;  %v1577_v57 = vmul.f32 0.5, %v506_v3  ;;  %v530_v23 = vsel %vm529_vm4, %v1564_v8, -inf  ;;  %v1789_v13 = vld [vmem:[#allocation9_spill] sm:$0xff] }
 0x10e   : > { %v725_v48 = vsel %vm219_vm1, %v722_v46, %v1778_v11  ;;  %v759_v39 = vadd.f32 %v755_v17, %v744_v36  ;;  %v728_v9 = vadd.f32 %v723_v59, %v698_v37  ;;  %v534_v20 = vsel %vm533_vm5, %v1571_v28, -inf  ;;  %v1787_v46 = vld [vmem:[#allocation12_spill] sm:$0xff] }
 0x10f   : > { %v729_v56 = vadd.f32 %v725_v48, %v699_v24  ;;  %v760_v38 = vmul.f32 3.0, %v1286_v45  ;;  %v761_v52 = vmul.f32 3.0, %v1282_v43  ;;  %v1779_v40 = vrot.slane %v1300_v55, 4  ;;  %v1785_v55 = vld [vmem:[#allocation11_spill] sm:$0xff]  ;;  %v1792_v48 = vld [vmem:[#allocation6_spill] sm:$0xff] }
 0x110   : > { %v1780_v19 = vrot.slane %v1310_v41, 4  ;;  %v532_v2 = vsel %vm531_vm6, %v1577_v57, -inf  ;;  %v1781_v18 = vrot.slane %v1351_v22, 4  ;;  %v784_v49 = vmul.f32 2.0, %v1286_v45 }
 0x111   : > { %v1782_v53 = vmov %v1779_v40  ;;  %v535_v37 = vmax.f32 %v530_v23, %v532_v2  ;;  %v766_v6 = vrot.slane %v760_v38, 4  ;;  %v767_v62 = vrot.slane %v761_v52, 4  ;;  %v1793_v38 = vld [vmem:[#allocation5_spill] sm:$0xff]  ;;  %v1794_v52 = vld [vmem:[#allocation14_spill] sm:$0xff] }
 0x112   : > { %v777_v7 = vsel %vm473_vm3, %v1780_v19, %v1779_v40  ;;  %v779_v47 = vsel %vm473_vm3, %v1782_v53, %v1781_v18  ;;  %v785_v41 = vmul.f32 2.0, %v1282_v43  ;;  %v791_v24 = vrot.slane %v784_v49, 5 }
 0x113   : > { %v782_v44 = vadd.f32 %v777_v7, %v758_v58  ;;  %v783_v27 = vadd.f32 %v779_v47, %v759_v39  ;;  %v800_v34 = vrot.slane %v1783_v25, 5  ;;  %v801_v5 = vrot.slane %v1784_v10, 5  ;;  %v1790_v58 = vld [vmem:[#allocation13_spill] sm:$0xff] }
 0x114   : > { %v536_v61 = vmax.f32 %v535_v37, %v534_v20  ;;  %v768_v22 = vsel %vm473_vm3, %v766_v6, %v767_v62  ;;  %v1786_v31 = vrot.slane %v1785_v55, 4  ;;  %v813_v0 = vrot.slane %v1286_v45, 6 }
 0x115   : > { %v773_v15 = vadd.f32 %v768_v22, %v728_v9  ;;  %v792_v16 = vrot.slane %v785_v41, 5  ;;  %v802_v4 = vsel %vm790_vm7, %v800_v34, %v801_v5  ;;  %v1788_v33 = vrot.slane %v1787_v46, 5 }
 0x116   : > { %v770_v14 = vsel %vm473_vm3, %v767_v62, %v1786_v31  ;;  %537 = vmax.xlane.f32.xlu0 %v536_v61  ;;  %v807_v30 = vadd.f32 %v802_v4, %v782_v44  ;;  %v814_v3 = vrot.slane %v1282_v43, 6  ;;  %v816_v35 = vrot.slane %v1789_v13, 6 }
 0x117   : > { %v774_v36 = vadd.f32 %v770_v14, %v729_v56  ;;  %v804_v63 = vsel %vm790_vm7, %v801_v5, %v1788_v33  ;;  %v793_v17 = vsel %vm790_vm7, %v791_v24, %v792_v16  ;;  %v1791_v45 = vrot.slane %v1790_v58, 5 }
 0x118   : > { %v808_v11 = vadd.f32 %v804_v63, %v783_v27  ;;  %v825_v39 = vrot.slane %v1792_v48, 6  ;;  %v798_v23 = vadd.f32 %v793_v17, %v773_v15  ;;  %v815_v56 = vsel %vm812_vm8, %v813_v0, %v814_v3 }
 0x119   : > { %v795_v59 = vsel %vm790_vm7, %v792_v16, %v1791_v45  ;;  %v817_v20 = vsel %vm812_vm8, %v814_v3, %v816_v35  ;;  %v826_v43 = vrot.slane %v1793_v38, 6  ;;  %v213_v40 = vadd.f32 %v1484_v21, %v1794_v52  ;;  %v1798_v21 = vld [vmem:[#allocation10_spill] sm:$0xff] }
 0x11a   : > { %v799_v9 = vadd.f32 %v795_v59, %v774_v36  ;;  %v229_v19 = vadd.f32 %v1499_v51, %v1476_v54  ;;  %v1795_v7 = vrot.slane %v1459_v26, 2  ;;  %v1796_v2 = vrot.slane %v1794_v52, 2 }
 0x11b   : > { %v820_v53 = vadd.f32 %v815_v56, %v798_v23  ;;  %v1797_v44 = vrot.slane %v1456_v32, 2  ;;  %v247_v37 = vand.u32 2147483647, %v1501_v50  ;;  %v827_v6 = vsel %vm812_vm8, %v825_v39, %v826_v43 }
 0x11c   : > { %v236_v18 = vsel %vm219_vm1, %v1796_v2, %v1795_v7  ;;  %v821_v47 = vadd.f32 %v817_v20, %v799_v9  ;;  %v1799_v62 = vrot.slane %v1798_v21, 6  ;;  %v246_v26 = vand.u32 2147483647, %v229_v19 }
 0x11d   : > { %v244_v49 = vadd.f32 %v1797_v44, %v1481_v1  ;;  %v242_v51 = vadd.f32 %v236_v18, %v213_v40  ;;  %v832_v27 = vadd.f32 %v827_v6, %v807_v30  ;;  %v834_v24 = vand.u32 2147483647, %v820_v53 }
 0x11e   : > { %v829_v54 = vsel %vm812_vm8, %v826_v43, %v1799_v62  ;;  %v252_v32 = vadd.f32 %v249_v12, %v246_v26  ;;  %v835_v1 = vand.u32 2147483647, %v821_v47  ;;  %vm527_vm0 = vcmask 122880  }
 0x11f   : > { %v833_v41 = vadd.f32 %v829_v54, %v808_v11  ;;  %v248_v25 = vand.u32 2147483647, %v242_v51  ;;  %v250_v34 = vand.u32 2147483647, %v244_v49  ;;  %v836_v50 = vand.u32 2147483647, %v832_v27 }
 0x120   : > { %v255_v22 = vmul.f32 0.5, %v252_v32 }
 0x121   : > { %v837_v10 = vand.u32 2147483647, %v833_v41  ;;  %v251_v5 = vadd.f32 %v248_v25, %v245_v42  ;;  %v253_v61 = vadd.f32 %v250_v34, %v247_v37  ;;  %v838_v55 = vadd.f32 %v836_v50, %v834_v24 }
 0x122   : > { %v278_v15 = vsel %vm277_vm9, %v255_v22, -inf }
 0x123   : > { %v839_v31 = vadd.f32 %v837_v10, %v835_v1  ;;  %v254_v14 = vmul.f32 0.5, %v251_v5  ;;  %v256_v0 = vmul.f32 0.5, %v253_v61  ;;  %v840_v36 = vmul.f32 0.5, %v838_v55 }
 0x125   : > { %v841_v16 = vmul.f32 0.5, %v839_v31  ;;  %v276_v60 = vsel %vm275_vm10, %v254_v14, -inf  ;;  %v845_v12 = vsel %vm271_vm11, %v840_v36, -inf  ;;  %975 = vst.msk [vmem:[%s1647_s6 + $0x20] sm:$0xff] %vm271_vm11, %v840_v36  ;;  %v280_v46 = vsel %vm279_vm12, %v256_v0, -inf }
 0x126   : > { %v281_v29 = vmax.f32 %v276_v60, %v278_v15 }
 0x127   : > { %v846_v4 = vsel %vm271_vm11, %v841_v16, -inf  ;;  %976 = vst.msk [vmem:[%s1647_s6 + $0x28] sm:$0xff] %vm271_vm11, %v841_v16 }
 0x128   : > { %v847_v42 = vmax.f32 %v845_v12, %v846_v4  ;;  %v282_v33 = vmax.f32 %v281_v29, %v280_v46 }
 0x12a   : > { %848 = vmax.xlane.f32.xlu0 %v847_v42  ;;  %283 = vmax.xlane.f32.xlu1 %v282_v33 }
 0x13b   : > { %260 = vrot.lane.b32.xlu1 %v254_v14, %s1101_s27 }
 0x13f   : > { %264 = vrot.lane.b32.xlu1 %v256_v0, %s1101_s27 }
 0x140   : > { %262 = vrot.lane.b32.xlu0 %v255_v22, %s1101_s27 }
 0x143   : > { %514 = vrot.lane.b32.xlu1 %v1564_v8, %s1100_s26 }
 0x144   : > { %516 = vrot.lane.b32.xlu0 %v1577_v57, %s1100_s26 }
 0x147   : > { %518 = vrot.lane.b32.xlu1 %v1571_v28, %s1100_s26 }
 0x1a3   : > { %v538_v63 = vpop.xlane.xlu0 %537 }
 0x1a4   : > { %v539_v30 = vrot.slane %v538_v63, 4 }
 0x1a6   : > { %v540_v3 = vmax.f32 %v538_v63, %v539_v30 }
 0x1a8   : > { %v541_v35 = vrot.slane %v540_v3, 2 }
 0x1aa   : > { %v542_v28 = vmax.f32 %v540_v3, %v541_v35 }
 0x1ac   : > { %v543_v38 = vrot.slane %v542_v28, 1 }
 0x1ae   : > { %v544_v7 = vmax.f32 %v542_v28, %v543_v38 }
 0x1b7   : > { %v849_v13 = vpop.xlane.xlu0 %848  ;;  %v284_v58 = vpop.xlane.xlu1 %283 }
 0x1b8   : > { %v850_v17 = vrot.slane %v849_v13, 4  ;;  %v285_v45 = vrot.slane %v284_v58, 4 }
 0x1ba   : > { %v851_v59 = vmax.f32 %v849_v13, %v850_v17  ;;  %v286_v57 = vmax.f32 %v284_v58, %v285_v45 }
 0x1bb   : > { %v263_v11 = vpop.permute.xlu0 %262  ;;  %v261_v8 = vpop.permute.xlu1 %260 }
 0x1bc   : > { %v852_v48 = vrot.slane %v851_v59, 2  ;;  %272 = vst.msk [vmem:[%s1647_s6 + $0x6] sm:$0xff] %vm271_vm11, %v263_v11  ;;  %v287_v39 = vrot.slane %v286_v57, 2 }
 0x1bd   : > { %270 = vst.msk [vmem:[%s1647_s6 - $0x2] sm:$0xfc] %vm269_vm13, %v261_v8 }
 0x1be   : > { %v853_v23 = vmax.f32 %v851_v59, %v852_v48  ;;  %v288_v56 = vmax.f32 %v286_v57, %v287_v39 }
 0x1bf   : > { %v517_v9 = vpop.permute.xlu0 %516  ;;  %v265_v20 = vpop.permute.xlu1 %264 }
 0x1c0   : > { %973 = vst.msk [vmem:[%s1647_s6 + $0x17] sm:$0xff] %vm271_vm11, %v517_v9  ;;  %v289_v43 = vrot.slane %v288_v56, 1  ;;  %v854_v52 = vrot.slane %v853_v23, 1 }
 0x1c1   : > { %274 = vst.msk [vmem:[%s1647_s6 + $0xe] sm:$0x3] %vm273_vm14, %v265_v20 }
 0x1c2   : > { %v290_v40 = vmax.f32 %v288_v56, %v289_v43  ;;  %v855_v2 = vmax.f32 %v853_v23, %v854_v52 }
 0x1c3   : > { %v515_v19 = vpop.permute.xlu1 %514 }
 0x1c4   : > { %972 = vst.msk [vmem:[%s1647_s6 + $0xf] sm:$0xfe] %vm524_vm15, %v515_v19 }
 0x1c5   : > { %982 = vpush %v290_v40 }
 0x1c6   : > { %984 = vpush %v544_v7 }
 0x1c7   : > { %986 = vpush %v855_v2  ;;  %v519_v18 = vpop.permute.xlu1 %518 }
 0x1c8   : > { %974 = vst.msk [vmem:[%s1647_s6 + $0x1f] sm:$0x1] %vm527_vm0, %v519_v18 }
 0x1c9   : > { %1049 = shalt.err (!%p1046_p3)
}
 0x1ca   : > { %s1050_s26 = scalar_lea.hbm %s1676_s17, 768  ;;  %s1054_s29 = scalar_lea.hbm %s1727_s1, 1536 }
 0x1cb   : > { %p1051_p4 = scmp.ne.s32.totalorder %s1676_s17, %s1050_s26  ;;  %p1055_p9 = scmp.lt.u32.totalorder %s1676_s17, %s1727_s1 }
 0x1cc   : > { %p1056_p10 = scmp.lt.u32.totalorder %s1054_s29, %s1050_s26  ;;  %p1058_p12 = scmp.lt.u32.totalorder %s1050_s26, %s1676_s17 }
 0x1cd   : > { %p1052_p7 = pnand %p1051_p4, %p1162_p5 }
 0x1ce   : > { %p1057_p11 = por %p1056_p10, %p1055_p9 }
 0x1cf   : > { %p1053_p8 = pneg %p1052_p7 }
 0x1d0   : > { %p1059_p13 = por %p1058_p12, %p1057_p11 }
 0x1d2   : > { %p1060_p0 = pnand %p1059_p13, %p1053_p8 }
 0x1d4   : > { %1063 = shalt.err (!%p1060_p0)
}
 0x1d5   : > { %s1107_s4 = smov 128   ;;  %s1108_s5 = smov 8  }
 0x1d6   : > { %989 = dma.vmem_to_hbm [thread:$0]  (%p1162_p5), %s1671_s8, 768, %s1676_s17, %s1681_s13, %s1107_s4, %s1107_s4, %s1108_s5  }
 0x1d7   : > { %s971_s6 = sshll.u32 %s1174_s21, 2 }
 0x1d8   : > { %s152_s16 = scalar_lea.vmem %s1728_s2, %s971_s6 }
 0x1f6   : > { %s983_s22 = spop %982 }
 0x1f7   : > { %v292_v53 = vstv %s983_s22  ;;  %s985_s23 = spop %984 }
 0x1f8   : > { %293 = vst [vmem:[%s152_s16] sm:$0x1] %v292_v53  ;;  %v546_v47 = vstv %s985_s23  ;;  %s987_s24 = spop %986 }
 0x1f9   : > { %547 = vst [vmem:[%s152_s16 + $0x1] sm:$0x1] %v546_v47  ;;  %v857_v44 = vstv %s987_s24 }
 0x1fa   : > { %858 = vst [vmem:[%s152_s16 + $0x2] sm:$0x1] %v857_v44 }
 0x1fb PF: > { %p995_p1 = scmp.ge.s32.totalorder %s1098_s12, 2  ;;  %s895_s19 = sand.u32 1, %s1086_s9  }
 0x1fc   : > { %s896_s21 = scalar_lea.sflag [#allocation3], %s895_s19 }
 0x1fd   : > { %p992_p5 = pnand %p995_p1, %p1166_p6 }
 0x1ff   : > { %1081 = dma.done.wait (!%p992_p5), %s896_s21, 768  }
 0x200   : > { %1083 = vsyncadd (!%p992_p5), %s896_s21, 4294966528  ;;  %p13_p2 = scmp.ge.s32.totalorder %s1149_s15, 4   ;;  %s1800_s9 = smov %s1090_s10 }
 0x201   : > { %s1801_s10 = smov %s1094_s11  ;;  %s1802_s11 = smov %s1160_s18 }
 0x202   : > { %s1803_s12 = smov %s1149_s15  ;;  %15 = sbr.rel (!%p13_p2) target bundleno = 3 (0x3), region = 73 }
 0x209   :  { %908 = vsyncpa [#allocation3], 1 }
 0x20a   :  { %910 = vsyncpa [#allocation3 + $0x1], 1 }

</bundles_post_ra>
